<compile_context>
chip_gen: v5e
topology: v5e:2x2
jax: 0.10.0
libtpu: 0.0.40
codegen_flags: <defaults>
</compile_context>

<pallas_src>
import jax
import jax.numpy as jnp
from jax import lax
from jax.experimental import pallas as pl
from jax.experimental.pallas import tpu as pltpu

C_IN, C_OUT, KH, KW = 3, 6, 3, 3
NB_SUB = 8                      # compute sub-tile (sublane granule)
MAX_SUBTILES_PER_BLOCK = 16     # caps the unrolled inner loop / code size


def _make_kernel(H, W):
    HW = H * W
    # Lane-dense layout requirement (wrapper pads W so this always holds).
    assert HW % 128 == 0, "lane-dense layout requires H*W % 128 == 0"

    def conv2d_kernel(x_ref, w_ref, b_ref, o_ref):
        # x_ref : VMEM (block, C_IN*HW)      -- images, channel-major, spatially flat
        # w_ref : SMEM (C_OUT*C_IN*KH*KW,)   -- flattened Conv2d weight (OIHW order)
        # b_ref : SMEM (C_OUT,)              -- bias
        # o_ref : VMEM (block, C_OUT*HW)
        rows = x_ref.shape[0]
        n_sub = rows // NB_SUB

        # Hoist every SMEM scalar read out of the sub-tile loop: 162 weights +
        # 6 biases are read once per grid step and reused by all sub-tiles.
        w = [w_ref[i] for i in range(C_OUT * C_IN * KH * KW)]
        b = [b_ref[o] for o in range(C_OUT)]

        def sub_tile(t, carry):
            if isinstance(t, int):
                r0 = t * NB_SUB
            else:
                r0 = pl.multiple_of(t * NB_SUB, NB_SUB)

            # One f32 accumulator per output channel, initialized from the bias.
            accs = [jnp.full((NB_SUB, HW), b[o], jnp.float32) for o in range(C_OUT)]

            # Stream one (c, kh, kw) tap at a time; each rolled plane feeds all
            # C_OUT accumulators before it dies -> ~6 accs + 1 tap live at once.
            # Rolls run on the XLU slot (overlap the VALU MACs) and always
            # derive from the base plane (no chained-roll latency).
            for c in range(C_IN):
                plane = x_ref[pl.ds(r0, NB_SUB), c * HW:(c + 1) * HW]
                for kh in range(KH):
                    for kw in range(KW):
                        s = kh * W + kw                 # flattened tap offset
                        if s == 0:
                            tap = plane
                        else:
                            # tap[p] = plane[(p + s) mod HW]; wrapped lanes only
                            # land on output positions the wrapper crops away.
                            tap = pltpu.roll(plane, shift=HW - s, axis=1)
                        for o in range(C_OUT):
                            wi = ((o * C_IN + c) * KH + kh) * KW + kw
                            accs[o] = accs[o] + w[wi] * tap

            # Lane-dense, 128-aligned, unmasked stores (one wide store/channel).
            for o in range(C_OUT):
                o_ref[pl.ds(r0, NB_SUB), o * HW:(o + 1) * HW] = accs[o].astype(o_ref.dtype)
            return carry

        if n_sub == 1:
            sub_tile(0, 0)
        else:
            lax.fori_loop(0, n_sub, sub_tile, 0, unroll=True)

    return conv2d_kernel


def _padded_width(H, W):
    """Smallest Wp >= W with H*Wp % 128 == 0 (keeps the layout lane-dense)."""
    Wp = W
    while (H * Wp) % 128 != 0:
        Wp += 1
    return Wp


def _plan_batch(N, HW):
    """Pick (padded batch rows, BlockSpec block rows)."""
    # Sublane-aligned rows; at least 16 so the 'parallel' batch axis always has
    # >= 2 grid steps (keeps both v7x TensorCores busy; neutral on v5e/v6e).
    n_pad = max(2 * NB_SUB, ((N + NB_SUB - 1) // NB_SUB) * NB_SUB)

    # Bound the double-buffered in+out block bytes by a conservative scoped
    # VMEM budget (v5e scoped default is 16 MiB; v7x physical VMEM is 64 MiB),
    # and cap the number of sub-tiles per block to keep the unrolled loop short.
    bytes_per_row = (C_IN + C_OUT) * HW * 4
    vmem_budget = 12 * 1024 * 1024
    max_rows_vmem = max(NB_SUB, (vmem_budget // (2 * bytes_per_row)) // NB_SUB * NB_SUB)

    cap = min(MAX_SUBTILES_PER_BLOCK * NB_SUB, max_rows_vmem, n_pad // 2)
    cap = max(NB_SUB, (cap // NB_SUB) * NB_SUB)

    steps = max(2, -(-n_pad // cap))                       # ceil, >= 2 grid steps
    block = -(-n_pad // steps)                             # ceil rows per step
    block = ((block + NB_SUB - 1) // NB_SUB) * NB_SUB      # sublane-aligned
    n_pad = steps * block
    return n_pad, block


def conv2d_forward(x, weight, bias):
    """x:(N,3,H,W) f32, weight:(6,3,3,3) f32, bias:(6,) f32 -> (N,6,H-2,W-2)."""
    N, C, H, W = x.shape
    assert C == C_IN
    OH, OW = H - KH + 1, W - KW + 1
    assert OH >= 1 and OW >= 1

    # Pad width so H*Wp % 128 == 0: per-channel slices / stores stay full-width
    # unmasked vector ops (the lane-dense property this kernel is built on).
    Wp = _padded_width(H, W)
    HW = H * Wp

    n_pad, block = _plan_batch(N, HW)

    xp = x.astype(jnp.float32)
    if Wp != W:
        xp = jnp.pad(xp, ((0, 0), (0, 0), (0, 0), (0, Wp - W)))
    x_flat = xp.reshape(N, C_IN * HW)
    if n_pad != N:
        x_flat = jnp.pad(x_flat, ((0, n_pad - N), (0, 0)))

    w_flat = weight.reshape(-1).astype(jnp.float32)   # OIHW order matches kernel index math
    b_flat = bias.astype(jnp.float32)

    # VMEM limit from actual double-buffered block bytes (+ headroom), clamped
    # to stay inside v7x's 64 MiB physical VMEM.
    block_bytes = block * (C_IN + C_OUT) * HW * 4
    vmem_limit = int(2 * block_bytes * 1.25) + (2 << 20)
    vmem_limit = min(max(vmem_limit, 16 << 20), 64 << 20)

    out_flat = pl.pallas_call(
        _make_kernel(H, Wp),
        out_shape=jax.ShapeDtypeStruct((n_pad, C_OUT * HW), jnp.float32),
        grid=(n_pad // block,),
        in_specs=[
            pl.BlockSpec((block, C_IN * HW), lambda i: (i, 0)),
            pl.BlockSpec(memory_space=pltpu.MemorySpace.SMEM),
            pl.BlockSpec(memory_space=pltpu.MemorySpace.SMEM),
        ],
        out_specs=pl.BlockSpec((block, C_OUT * HW), lambda i: (i, 0)),
        compiler_params=pltpu.CompilerParams(
            dimension_semantics=("parallel",),
            vmem_limit_bytes=vmem_limit,
        ),
        cost_estimate=pl.CostEstimate(
            flops=2 * n_pad * C_OUT * C_IN * KH * KW * HW,
            bytes_accessed=4 * n_pad * (C_IN + C_OUT) * HW,
            transcendentals=0,
        ),
    )(x_flat, w_flat, b_flat)

    # Crop invalid border positions, width padding, and padded batch rows.
    # A consumer that accepts the padded lane-dense layout should read
    # `out_flat` directly and fuse/skip this copy.
    out = out_flat.reshape(n_pad, C_OUT, H, Wp)[:N, :, :OH, :OW]
    return out.astype(x.dtype)


if __name__ == "__main__":
    key = jax.random.PRNGKey(0)
    k_x, k_w, k_b = jax.random.split(key, 3)

    # Small shapes consistent with the module: batch=2, C_in=3, 16x16 spatial.
    N, H, W = 2, 16, 16
    x = jax.random.normal(k_x, (N, C_IN, H, W), jnp.float32)

    # Deterministic parameter init (PyTorch-style uniform bounds, synthetic values).
    fan_in = C_IN * KH * KW
    bound = 1.0 / (fan_in ** 0.5)
    weight = jax.random.uniform(k_w, (C_OUT, C_IN, KH, KW), jnp.float32, -bound, bound)
    bias = jax.random.uniform(k_b, (C_OUT,), jnp.float32, -bound, bound)

    out = conv2d_forward(x, weight, bias)
    out = jax.block_until_ready(out)

    # Reference check against XLA's convolution (same semantics as nn.Conv2d).
    ref = lax.conv_general_dilated(
        x, weight, window_strides=(1, 1), padding="VALID",
        dimension_numbers=("NCHW", "OIHW", "NCHW"),
    ) + bias[None, :, None, None]

    assert out.shape == (N, C_OUT, H - KH + 1, W - KW + 1)
    assert jnp.allclose(out, ref, atol=1e-4, rtol=1e-4)
    print("KERNEL_OK")
</pallas_src>

<mosaic_0001>
module attributes {stable_mosaic.version = 11 : i64} {
  func.func @conv2d_kernel(%arg0: i32, %arg1: memref<8x768xf32, #tpu.memory_space<vmem>>, %arg2: memref<162xf32, #tpu.memory_space<smem>>, %arg3: memref<6xf32, #tpu.memory_space<smem>>, %arg4: memref<8x1536xf32, #tpu.memory_space<vmem>>) attributes {dimension_semantics = [#tpu.dimension_semantics<parallel>], iteration_bounds = array<i64: 2>, scalar_prefetch = 0 : i64, scratch_operands = 0 : i64, tpu.core_type = #tpu.core_type<tc>, window_params = [{transform_indices = @transform_0, window_bounds = array<i64: 8, 768>}, {transform_indices = @transform_1, window_bounds = array<i64: 162>}, {transform_indices = @transform_2, window_bounds = array<i64: 6>}, {transform_indices = @transform_3, window_bounds = array<i64: 8, 1536>}]} {
    %c0 = arith.constant 0 : index
    %0 = memref.load %arg2[%c0] : memref<162xf32, #tpu.memory_space<smem>>
    %c1 = arith.constant 1 : index
    %1 = memref.load %arg2[%c1] : memref<162xf32, #tpu.memory_space<smem>>
    %c2 = arith.constant 2 : index
    %2 = memref.load %arg2[%c2] : memref<162xf32, #tpu.memory_space<smem>>
    %c3 = arith.constant 3 : index
    %3 = memref.load %arg2[%c3] : memref<162xf32, #tpu.memory_space<smem>>
    %c4 = arith.constant 4 : index
    %4 = memref.load %arg2[%c4] : memref<162xf32, #tpu.memory_space<smem>>
    %c5 = arith.constant 5 : index
    %5 = memref.load %arg2[%c5] : memref<162xf32, #tpu.memory_space<smem>>
    %c6 = arith.constant 6 : index
    %6 = memref.load %arg2[%c6] : memref<162xf32, #tpu.memory_space<smem>>
    %c7 = arith.constant 7 : index
    %7 = memref.load %arg2[%c7] : memref<162xf32, #tpu.memory_space<smem>>
    %c8 = arith.constant 8 : index
    %8 = memref.load %arg2[%c8] : memref<162xf32, #tpu.memory_space<smem>>
    %c9 = arith.constant 9 : index
    %9 = memref.load %arg2[%c9] : memref<162xf32, #tpu.memory_space<smem>>
    %c10 = arith.constant 10 : index
    %10 = memref.load %arg2[%c10] : memref<162xf32, #tpu.memory_space<smem>>
    %c11 = arith.constant 11 : index
    %11 = memref.load %arg2[%c11] : memref<162xf32, #tpu.memory_space<smem>>
    %c12 = arith.constant 12 : index
    %12 = memref.load %arg2[%c12] : memref<162xf32, #tpu.memory_space<smem>>
    %c13 = arith.constant 13 : index
    %13 = memref.load %arg2[%c13] : memref<162xf32, #tpu.memory_space<smem>>
    %c14 = arith.constant 14 : index
    %14 = memref.load %arg2[%c14] : memref<162xf32, #tpu.memory_space<smem>>
    %c15 = arith.constant 15 : index
    %15 = memref.load %arg2[%c15] : memref<162xf32, #tpu.memory_space<smem>>
    %c16 = arith.constant 16 : index
    %16 = memref.load %arg2[%c16] : memref<162xf32, #tpu.memory_space<smem>>
    %c17 = arith.constant 17 : index
    %17 = memref.load %arg2[%c17] : memref<162xf32, #tpu.memory_space<smem>>
    %c18 = arith.constant 18 : index
    %18 = memref.load %arg2[%c18] : memref<162xf32, #tpu.memory_space<smem>>
    %c19 = arith.constant 19 : index
    %19 = memref.load %arg2[%c19] : memref<162xf32, #tpu.memory_space<smem>>
    %c20 = arith.constant 20 : index
    %20 = memref.load %arg2[%c20] : memref<162xf32, #tpu.memory_space<smem>>
    %c21 = arith.constant 21 : index
    %21 = memref.load %arg2[%c21] : memref<162xf32, #tpu.memory_space<smem>>
    %c22 = arith.constant 22 : index
    %22 = memref.load %arg2[%c22] : memref<162xf32, #tpu.memory_space<smem>>
    %c23 = arith.constant 23 : index
    %23 = memref.load %arg2[%c23] : memref<162xf32, #tpu.memory_space<smem>>
    %c24 = arith.constant 24 : index
    %24 = memref.load %arg2[%c24] : memref<162xf32, #tpu.memory_space<smem>>
    %c25 = arith.constant 25 : index
    %25 = memref.load %arg2[%c25] : memref<162xf32, #tpu.memory_space<smem>>
    %c26 = arith.constant 26 : index
    %26 = memref.load %arg2[%c26] : memref<162xf32, #tpu.memory_space<smem>>
    %c27 = arith.constant 27 : index
    %27 = memref.load %arg2[%c27] : memref<162xf32, #tpu.memory_space<smem>>
    %c28 = arith.constant 28 : index
    %28 = memref.load %arg2[%c28] : memref<162xf32, #tpu.memory_space<smem>>
    %c29 = arith.constant 29 : index
    %29 = memref.load %arg2[%c29] : memref<162xf32, #tpu.memory_space<smem>>
    %c30 = arith.constant 30 : index
    %30 = memref.load %arg2[%c30] : memref<162xf32, #tpu.memory_space<smem>>
    %c31 = arith.constant 31 : index
    %31 = memref.load %arg2[%c31] : memref<162xf32, #tpu.memory_space<smem>>
    %c32 = arith.constant 32 : index
    %32 = memref.load %arg2[%c32] : memref<162xf32, #tpu.memory_space<smem>>
    %c33 = arith.constant 33 : index
    %33 = memref.load %arg2[%c33] : memref<162xf32, #tpu.memory_space<smem>>
    %c34 = arith.constant 34 : index
    %34 = memref.load %arg2[%c34] : memref<162xf32, #tpu.memory_space<smem>>
    %c35 = arith.constant 35 : index
    %35 = memref.load %arg2[%c35] : memref<162xf32, #tpu.memory_space<smem>>
    %c36 = arith.constant 36 : index
    %36 = memref.load %arg2[%c36] : memref<162xf32, #tpu.memory_space<smem>>
    %c37 = arith.constant 37 : index
    %37 = memref.load %arg2[%c37] : memref<162xf32, #tpu.memory_space<smem>>
    %c38 = arith.constant 38 : index
    %38 = memref.load %arg2[%c38] : memref<162xf32, #tpu.memory_space<smem>>
    %c39 = arith.constant 39 : index
    %39 = memref.load %arg2[%c39] : memref<162xf32, #tpu.memory_space<smem>>
    %c40 = arith.constant 40 : index
    %40 = memref.load %arg2[%c40] : memref<162xf32, #tpu.memory_space<smem>>
    %c41 = arith.constant 41 : index
    %41 = memref.load %arg2[%c41] : memref<162xf32, #tpu.memory_space<smem>>
    %c42 = arith.constant 42 : index
    %42 = memref.load %arg2[%c42] : memref<162xf32, #tpu.memory_space<smem>>
    %c43 = arith.constant 43 : index
    %43 = memref.load %arg2[%c43] : memref<162xf32, #tpu.memory_space<smem>>
    %c44 = arith.constant 44 : index
    %44 = memref.load %arg2[%c44] : memref<162xf32, #tpu.memory_space<smem>>
    %c45 = arith.constant 45 : index
    %45 = memref.load %arg2[%c45] : memref<162xf32, #tpu.memory_space<smem>>
    %c46 = arith.constant 46 : index
    %46 = memref.load %arg2[%c46] : memref<162xf32, #tpu.memory_space<smem>>
    %c47 = arith.constant 47 : index
    %47 = memref.load %arg2[%c47] : memref<162xf32, #tpu.memory_space<smem>>
    %c48 = arith.constant 48 : index
    %48 = memref.load %arg2[%c48] : memref<162xf32, #tpu.memory_space<smem>>
    %c49 = arith.constant 49 : index
    %49 = memref.load %arg2[%c49] : memref<162xf32, #tpu.memory_space<smem>>
    %c50 = arith.constant 50 : index
    %50 = memref.load %arg2[%c50] : memref<162xf32, #tpu.memory_space<smem>>
    %c51 = arith.constant 51 : index
    %51 = memref.load %arg2[%c51] : memref<162xf32, #tpu.memory_space<smem>>
    %c52 = arith.constant 52 : index
    %52 = memref.load %arg2[%c52] : memref<162xf32, #tpu.memory_space<smem>>
    %c53 = arith.constant 53 : index
    %53 = memref.load %arg2[%c53] : memref<162xf32, #tpu.memory_space<smem>>
    %c54 = arith.constant 54 : index
    %54 = memref.load %arg2[%c54] : memref<162xf32, #tpu.memory_space<smem>>
    %c55 = arith.constant 55 : index
    %55 = memref.load %arg2[%c55] : memref<162xf32, #tpu.memory_space<smem>>
    %c56 = arith.constant 56 : index
    %56 = memref.load %arg2[%c56] : memref<162xf32, #tpu.memory_space<smem>>
    %c57 = arith.constant 57 : index
    %57 = memref.load %arg2[%c57] : memref<162xf32, #tpu.memory_space<smem>>
    %c58 = arith.constant 58 : index
    %58 = memref.load %arg2[%c58] : memref<162xf32, #tpu.memory_space<smem>>
    %c59 = arith.constant 59 : index
    %59 = memref.load %arg2[%c59] : memref<162xf32, #tpu.memory_space<smem>>
    %c60 = arith.constant 60 : index
    %60 = memref.load %arg2[%c60] : memref<162xf32, #tpu.memory_space<smem>>
    %c61 = arith.constant 61 : index
    %61 = memref.load %arg2[%c61] : memref<162xf32, #tpu.memory_space<smem>>
    %c62 = arith.constant 62 : index
    %62 = memref.load %arg2[%c62] : memref<162xf32, #tpu.memory_space<smem>>
    %c63 = arith.constant 63 : index
    %63 = memref.load %arg2[%c63] : memref<162xf32, #tpu.memory_space<smem>>
    %c64 = arith.constant 64 : index
    %64 = memref.load %arg2[%c64] : memref<162xf32, #tpu.memory_space<smem>>
    %c65 = arith.constant 65 : index
    %65 = memref.load %arg2[%c65] : memref<162xf32, #tpu.memory_space<smem>>
    %c66 = arith.constant 66 : index
    %66 = memref.load %arg2[%c66] : memref<162xf32, #tpu.memory_space<smem>>
    %c67 = arith.constant 67 : index
    %67 = memref.load %arg2[%c67] : memref<162xf32, #tpu.memory_space<smem>>
    %c68 = arith.constant 68 : index
    %68 = memref.load %arg2[%c68] : memref<162xf32, #tpu.memory_space<smem>>
    %c69 = arith.constant 69 : index
    %69 = memref.load %arg2[%c69] : memref<162xf32, #tpu.memory_space<smem>>
    %c70 = arith.constant 70 : index
    %70 = memref.load %arg2[%c70] : memref<162xf32, #tpu.memory_space<smem>>
    %c71 = arith.constant 71 : index
    %71 = memref.load %arg2[%c71] : memref<162xf32, #tpu.memory_space<smem>>
    %c72 = arith.constant 72 : index
    %72 = memref.load %arg2[%c72] : memref<162xf32, #tpu.memory_space<smem>>
    %c73 = arith.constant 73 : index
    %73 = memref.load %arg2[%c73] : memref<162xf32, #tpu.memory_space<smem>>
    %c74 = arith.constant 74 : index
    %74 = memref.load %arg2[%c74] : memref<162xf32, #tpu.memory_space<smem>>
    %c75 = arith.constant 75 : index
    %75 = memref.load %arg2[%c75] : memref<162xf32, #tpu.memory_space<smem>>
    %c76 = arith.constant 76 : index
    %76 = memref.load %arg2[%c76] : memref<162xf32, #tpu.memory_space<smem>>
    %c77 = arith.constant 77 : index
    %77 = memref.load %arg2[%c77] : memref<162xf32, #tpu.memory_space<smem>>
    %c78 = arith.constant 78 : index
    %78 = memref.load %arg2[%c78] : memref<162xf32, #tpu.memory_space<smem>>
    %c79 = arith.constant 79 : index
    %79 = memref.load %arg2[%c79] : memref<162xf32, #tpu.memory_space<smem>>
    %c80 = arith.constant 80 : index
    %80 = memref.load %arg2[%c80] : memref<162xf32, #tpu.memory_space<smem>>
    %c81 = arith.constant 81 : index
    %81 = memref.load %arg2[%c81] : memref<162xf32, #tpu.memory_space<smem>>
    %c82 = arith.constant 82 : index
    %82 = memref.load %arg2[%c82] : memref<162xf32, #tpu.memory_space<smem>>
    %c83 = arith.constant 83 : index
    %83 = memref.load %arg2[%c83] : memref<162xf32, #tpu.memory_space<smem>>
    %c84 = arith.constant 84 : index
    %84 = memref.load %arg2[%c84] : memref<162xf32, #tpu.memory_space<smem>>
    %c85 = arith.constant 85 : index
    %85 = memref.load %arg2[%c85] : memref<162xf32, #tpu.memory_space<smem>>
    %c86 = arith.constant 86 : index
    %86 = memref.load %arg2[%c86] : memref<162xf32, #tpu.memory_space<smem>>
    %c87 = arith.constant 87 : index
    %87 = memref.load %arg2[%c87] : memref<162xf32, #tpu.memory_space<smem>>
    %c88 = arith.constant 88 : index
    %88 = memref.load %arg2[%c88] : memref<162xf32, #tpu.memory_space<smem>>
    %c89 = arith.constant 89 : index
    %89 = memref.load %arg2[%c89] : memref<162xf32, #tpu.memory_space<smem>>
    %c90 = arith.constant 90 : index
    %90 = memref.load %arg2[%c90] : memref<162xf32, #tpu.memory_space<smem>>
    %c91 = arith.constant 91 : index
    %91 = memref.load %arg2[%c91] : memref<162xf32, #tpu.memory_space<smem>>
    %c92 = arith.constant 92 : index
    %92 = memref.load %arg2[%c92] : memref<162xf32, #tpu.memory_space<smem>>
    %c93 = arith.constant 93 : index
    %93 = memref.load %arg2[%c93] : memref<162xf32, #tpu.memory_space<smem>>
    %c94 = arith.constant 94 : index
    %94 = memref.load %arg2[%c94] : memref<162xf32, #tpu.memory_space<smem>>
    %c95 = arith.constant 95 : index
    %95 = memref.load %arg2[%c95] : memref<162xf32, #tpu.memory_space<smem>>
    %c96 = arith.constant 96 : index
    %96 = memref.load %arg2[%c96] : memref<162xf32, #tpu.memory_space<smem>>
    %c97 = arith.constant 97 : index
    %97 = memref.load %arg2[%c97] : memref<162xf32, #tpu.memory_space<smem>>
    %c98 = arith.constant 98 : index
    %98 = memref.load %arg2[%c98] : memref<162xf32, #tpu.memory_space<smem>>
    %c99 = arith.constant 99 : index
    %99 = memref.load %arg2[%c99] : memref<162xf32, #tpu.memory_space<smem>>
    %c100 = arith.constant 100 : index
    %100 = memref.load %arg2[%c100] : memref<162xf32, #tpu.memory_space<smem>>
    %c101 = arith.constant 101 : index
    %101 = memref.load %arg2[%c101] : memref<162xf32, #tpu.memory_space<smem>>
    %c102 = arith.constant 102 : index
    %102 = memref.load %arg2[%c102] : memref<162xf32, #tpu.memory_space<smem>>
    %c103 = arith.constant 103 : index
    %103 = memref.load %arg2[%c103] : memref<162xf32, #tpu.memory_space<smem>>
    %c104 = arith.constant 104 : index
    %104 = memref.load %arg2[%c104] : memref<162xf32, #tpu.memory_space<smem>>
    %c105 = arith.constant 105 : index
    %105 = memref.load %arg2[%c105] : memref<162xf32, #tpu.memory_space<smem>>
    %c106 = arith.constant 106 : index
    %106 = memref.load %arg2[%c106] : memref<162xf32, #tpu.memory_space<smem>>
    %c107 = arith.constant 107 : index
    %107 = memref.load %arg2[%c107] : memref<162xf32, #tpu.memory_space<smem>>
    %c108 = arith.constant 108 : index
    %108 = memref.load %arg2[%c108] : memref<162xf32, #tpu.memory_space<smem>>
    %c109 = arith.constant 109 : index
    %109 = memref.load %arg2[%c109] : memref<162xf32, #tpu.memory_space<smem>>
    %c110 = arith.constant 110 : index
    %110 = memref.load %arg2[%c110] : memref<162xf32, #tpu.memory_space<smem>>
    %c111 = arith.constant 111 : index
    %111 = memref.load %arg2[%c111] : memref<162xf32, #tpu.memory_space<smem>>
    %c112 = arith.constant 112 : index
    %112 = memref.load %arg2[%c112] : memref<162xf32, #tpu.memory_space<smem>>
    %c113 = arith.constant 113 : index
    %113 = memref.load %arg2[%c113] : memref<162xf32, #tpu.memory_space<smem>>
    %c114 = arith.constant 114 : index
    %114 = memref.load %arg2[%c114] : memref<162xf32, #tpu.memory_space<smem>>
    %c115 = arith.constant 115 : index
    %115 = memref.load %arg2[%c115] : memref<162xf32, #tpu.memory_space<smem>>
    %c116 = arith.constant 116 : index
    %116 = memref.load %arg2[%c116] : memref<162xf32, #tpu.memory_space<smem>>
    %c117 = arith.constant 117 : index
    %117 = memref.load %arg2[%c117] : memref<162xf32, #tpu.memory_space<smem>>
    %c118 = arith.constant 118 : index
    %118 = memref.load %arg2[%c118] : memref<162xf32, #tpu.memory_space<smem>>
    %c119 = arith.constant 119 : index
    %119 = memref.load %arg2[%c119] : memref<162xf32, #tpu.memory_space<smem>>
    %c120 = arith.constant 120 : index
    %120 = memref.load %arg2[%c120] : memref<162xf32, #tpu.memory_space<smem>>
    %c121 = arith.constant 121 : index
    %121 = memref.load %arg2[%c121] : memref<162xf32, #tpu.memory_space<smem>>
    %c122 = arith.constant 122 : index
    %122 = memref.load %arg2[%c122] : memref<162xf32, #tpu.memory_space<smem>>
    %c123 = arith.constant 123 : index
    %123 = memref.load %arg2[%c123] : memref<162xf32, #tpu.memory_space<smem>>
    %c124 = arith.constant 124 : index
    %124 = memref.load %arg2[%c124] : memref<162xf32, #tpu.memory_space<smem>>
    %c125 = arith.constant 125 : index
    %125 = memref.load %arg2[%c125] : memref<162xf32, #tpu.memory_space<smem>>
    %c126 = arith.constant 126 : index
    %126 = memref.load %arg2[%c126] : memref<162xf32, #tpu.memory_space<smem>>
    %c127 = arith.constant 127 : index
    %127 = memref.load %arg2[%c127] : memref<162xf32, #tpu.memory_space<smem>>
    %c128 = arith.constant 128 : index
    %128 = memref.load %arg2[%c128] : memref<162xf32, #tpu.memory_space<smem>>
    %c129 = arith.constant 129 : index
    %129 = memref.load %arg2[%c129] : memref<162xf32, #tpu.memory_space<smem>>
    %c130 = arith.constant 130 : index
    %130 = memref.load %arg2[%c130] : memref<162xf32, #tpu.memory_space<smem>>
    %c131 = arith.constant 131 : index
    %131 = memref.load %arg2[%c131] : memref<162xf32, #tpu.memory_space<smem>>
    %c132 = arith.constant 132 : index
    %132 = memref.load %arg2[%c132] : memref<162xf32, #tpu.memory_space<smem>>
    %c133 = arith.constant 133 : index
    %133 = memref.load %arg2[%c133] : memref<162xf32, #tpu.memory_space<smem>>
    %c134 = arith.constant 134 : index
    %134 = memref.load %arg2[%c134] : memref<162xf32, #tpu.memory_space<smem>>
    %c135 = arith.constant 135 : index
    %135 = memref.load %arg2[%c135] : memref<162xf32, #tpu.memory_space<smem>>
    %c136 = arith.constant 136 : index
    %136 = memref.load %arg2[%c136] : memref<162xf32, #tpu.memory_space<smem>>
    %c137 = arith.constant 137 : index
    %137 = memref.load %arg2[%c137] : memref<162xf32, #tpu.memory_space<smem>>
    %c138 = arith.constant 138 : index
    %138 = memref.load %arg2[%c138] : memref<162xf32, #tpu.memory_space<smem>>
    %c139 = arith.constant 139 : index
    %139 = memref.load %arg2[%c139] : memref<162xf32, #tpu.memory_space<smem>>
    %c140 = arith.constant 140 : index
    %140 = memref.load %arg2[%c140] : memref<162xf32, #tpu.memory_space<smem>>
    %c141 = arith.constant 141 : index
    %141 = memref.load %arg2[%c141] : memref<162xf32, #tpu.memory_space<smem>>
    %c142 = arith.constant 142 : index
    %142 = memref.load %arg2[%c142] : memref<162xf32, #tpu.memory_space<smem>>
    %c143 = arith.constant 143 : index
    %143 = memref.load %arg2[%c143] : memref<162xf32, #tpu.memory_space<smem>>
    %c144 = arith.constant 144 : index
    %144 = memref.load %arg2[%c144] : memref<162xf32, #tpu.memory_space<smem>>
    %c145 = arith.constant 145 : index
    %145 = memref.load %arg2[%c145] : memref<162xf32, #tpu.memory_space<smem>>
    %c146 = arith.constant 146 : index
    %146 = memref.load %arg2[%c146] : memref<162xf32, #tpu.memory_space<smem>>
    %c147 = arith.constant 147 : index
    %147 = memref.load %arg2[%c147] : memref<162xf32, #tpu.memory_space<smem>>
    %c148 = arith.constant 148 : index
    %148 = memref.load %arg2[%c148] : memref<162xf32, #tpu.memory_space<smem>>
    %c149 = arith.constant 149 : index
    %149 = memref.load %arg2[%c149] : memref<162xf32, #tpu.memory_space<smem>>
    %c150 = arith.constant 150 : index
    %150 = memref.load %arg2[%c150] : memref<162xf32, #tpu.memory_space<smem>>
    %c151 = arith.constant 151 : index
    %151 = memref.load %arg2[%c151] : memref<162xf32, #tpu.memory_space<smem>>
    %c152 = arith.constant 152 : index
    %152 = memref.load %arg2[%c152] : memref<162xf32, #tpu.memory_space<smem>>
    %c153 = arith.constant 153 : index
    %153 = memref.load %arg2[%c153] : memref<162xf32, #tpu.memory_space<smem>>
    %c154 = arith.constant 154 : index
    %154 = memref.load %arg2[%c154] : memref<162xf32, #tpu.memory_space<smem>>
    %c155 = arith.constant 155 : index
    %155 = memref.load %arg2[%c155] : memref<162xf32, #tpu.memory_space<smem>>
    %c156 = arith.constant 156 : index
    %156 = memref.load %arg2[%c156] : memref<162xf32, #tpu.memory_space<smem>>
    %c157 = arith.constant 157 : index
    %157 = memref.load %arg2[%c157] : memref<162xf32, #tpu.memory_space<smem>>
    %c158 = arith.constant 158 : index
    %158 = memref.load %arg2[%c158] : memref<162xf32, #tpu.memory_space<smem>>
    %c159 = arith.constant 159 : index
    %159 = memref.load %arg2[%c159] : memref<162xf32, #tpu.memory_space<smem>>
    %c160 = arith.constant 160 : index
    %160 = memref.load %arg2[%c160] : memref<162xf32, #tpu.memory_space<smem>>
    %c161 = arith.constant 161 : index
    %161 = memref.load %arg2[%c161] : memref<162xf32, #tpu.memory_space<smem>>
    %c0_0 = arith.constant 0 : index
    %162 = memref.load %arg3[%c0_0] : memref<6xf32, #tpu.memory_space<smem>>
    %c1_1 = arith.constant 1 : index
    %163 = memref.load %arg3[%c1_1] : memref<6xf32, #tpu.memory_space<smem>>
    %c2_2 = arith.constant 2 : index
    %164 = memref.load %arg3[%c2_2] : memref<6xf32, #tpu.memory_space<smem>>
    %c3_3 = arith.constant 3 : index
    %165 = memref.load %arg3[%c3_3] : memref<6xf32, #tpu.memory_space<smem>>
    %c4_4 = arith.constant 4 : index
    %166 = memref.load %arg3[%c4_4] : memref<6xf32, #tpu.memory_space<smem>>
    %c5_5 = arith.constant 5 : index
    %167 = memref.load %arg3[%c5_5] : memref<6xf32, #tpu.memory_space<smem>>
    %168 = vector.broadcast %162 : f32 to vector<8x256xf32>
    %169 = vector.broadcast %163 : f32 to vector<8x256xf32>
    %170 = vector.broadcast %164 : f32 to vector<8x256xf32>
    %171 = vector.broadcast %165 : f32 to vector<8x256xf32>
    %172 = vector.broadcast %166 : f32 to vector<8x256xf32>
    %173 = vector.broadcast %167 : f32 to vector<8x256xf32>
    %c0_6 = arith.constant 0 : index
    %c0_7 = arith.constant 0 : index
    %174 = vector.load %arg1[%c0_6, %c0_7] : memref<8x768xf32, #tpu.memory_space<vmem>>, vector<8x256xf32>
    %175 = vector.broadcast %0 : f32 to vector<8x256xf32>
    %176 = arith.mulf %175, %174 : vector<8x256xf32>
    %177 = arith.addf %168, %176 : vector<8x256xf32>
    %178 = vector.broadcast %27 : f32 to vector<8x256xf32>
    %179 = arith.mulf %178, %174 : vector<8x256xf32>
    %180 = arith.addf %169, %179 : vector<8x256xf32>
    %181 = vector.broadcast %54 : f32 to vector<8x256xf32>
    %182 = arith.mulf %181, %174 : vector<8x256xf32>
    %183 = arith.addf %170, %182 : vector<8x256xf32>
    %184 = vector.broadcast %81 : f32 to vector<8x256xf32>
    %185 = arith.mulf %184, %174 : vector<8x256xf32>
    %186 = arith.addf %171, %185 : vector<8x256xf32>
    %187 = vector.broadcast %108 : f32 to vector<8x256xf32>
    %188 = arith.mulf %187, %174 : vector<8x256xf32>
    %189 = arith.addf %172, %188 : vector<8x256xf32>
    %190 = vector.broadcast %135 : f32 to vector<8x256xf32>
    %191 = arith.mulf %190, %174 : vector<8x256xf32>
    %192 = arith.addf %173, %191 : vector<8x256xf32>
    %c255_i32 = arith.constant 255 : i32
    %193 = tpu.dynamic_rotate %174 by %c255_i32 dim 1 : vector<8x256xf32>, i32 -> vector<8x256xf32>
    %194 = vector.broadcast %1 : f32 to vector<8x256xf32>
    %195 = arith.mulf %194, %193 : vector<8x256xf32>
    %196 = arith.addf %177, %195 : vector<8x256xf32>
    %197 = vector.broadcast %28 : f32 to vector<8x256xf32>
    %198 = arith.mulf %197, %193 : vector<8x256xf32>
    %199 = arith.addf %180, %198 : vector<8x256xf32>
    %200 = vector.broadcast %55 : f32 to vector<8x256xf32>
    %201 = arith.mulf %200, %193 : vector<8x256xf32>
    %202 = arith.addf %183, %201 : vector<8x256xf32>
    %203 = vector.broadcast %82 : f32 to vector<8x256xf32>
    %204 = arith.mulf %203, %193 : vector<8x256xf32>
    %205 = arith.addf %186, %204 : vector<8x256xf32>
    %206 = vector.broadcast %109 : f32 to vector<8x256xf32>
    %207 = arith.mulf %206, %193 : vector<8x256xf32>
    %208 = arith.addf %189, %207 : vector<8x256xf32>
    %209 = vector.broadcast %136 : f32 to vector<8x256xf32>
    %210 = arith.mulf %209, %193 : vector<8x256xf32>
    %211 = arith.addf %192, %210 : vector<8x256xf32>
    %c254_i32 = arith.constant 254 : i32
    %212 = tpu.dynamic_rotate %174 by %c254_i32 dim 1 : vector<8x256xf32>, i32 -> vector<8x256xf32>
    %213 = vector.broadcast %2 : f32 to vector<8x256xf32>
    %214 = arith.mulf %213, %212 : vector<8x256xf32>
    %215 = arith.addf %196, %214 : vector<8x256xf32>
    %216 = vector.broadcast %29 : f32 to vector<8x256xf32>
    %217 = arith.mulf %216, %212 : vector<8x256xf32>
    %218 = arith.addf %199, %217 : vector<8x256xf32>
    %219 = vector.broadcast %56 : f32 to vector<8x256xf32>
    %220 = arith.mulf %219, %212 : vector<8x256xf32>
    %221 = arith.addf %202, %220 : vector<8x256xf32>
    %222 = vector.broadcast %83 : f32 to vector<8x256xf32>
    %223 = arith.mulf %222, %212 : vector<8x256xf32>
    %224 = arith.addf %205, %223 : vector<8x256xf32>
    %225 = vector.broadcast %110 : f32 to vector<8x256xf32>
    %226 = arith.mulf %225, %212 : vector<8x256xf32>
    %227 = arith.addf %208, %226 : vector<8x256xf32>
    %228 = vector.broadcast %137 : f32 to vector<8x256xf32>
    %229 = arith.mulf %228, %212 : vector<8x256xf32>
    %230 = arith.addf %211, %229 : vector<8x256xf32>
    %c240_i32 = arith.constant 240 : i32
    %231 = tpu.dynamic_rotate %174 by %c240_i32 dim 1 : vector<8x256xf32>, i32 -> vector<8x256xf32>
    %232 = vector.broadcast %3 : f32 to vector<8x256xf32>
    %233 = arith.mulf %232, %231 : vector<8x256xf32>
    %234 = arith.addf %215, %233 : vector<8x256xf32>
    %235 = vector.broadcast %30 : f32 to vector<8x256xf32>
    %236 = arith.mulf %235, %231 : vector<8x256xf32>
    %237 = arith.addf %218, %236 : vector<8x256xf32>
    %238 = vector.broadcast %57 : f32 to vector<8x256xf32>
    %239 = arith.mulf %238, %231 : vector<8x256xf32>
    %240 = arith.addf %221, %239 : vector<8x256xf32>
    %241 = vector.broadcast %84 : f32 to vector<8x256xf32>
    %242 = arith.mulf %241, %231 : vector<8x256xf32>
    %243 = arith.addf %224, %242 : vector<8x256xf32>
    %244 = vector.broadcast %111 : f32 to vector<8x256xf32>
    %245 = arith.mulf %244, %231 : vector<8x256xf32>
    %246 = arith.addf %227, %245 : vector<8x256xf32>
    %247 = vector.broadcast %138 : f32 to vector<8x256xf32>
    %248 = arith.mulf %247, %231 : vector<8x256xf32>
    %249 = arith.addf %230, %248 : vector<8x256xf32>
    %c239_i32 = arith.constant 239 : i32
    %250 = tpu.dynamic_rotate %174 by %c239_i32 dim 1 : vector<8x256xf32>, i32 -> vector<8x256xf32>
    %251 = vector.broadcast %4 : f32 to vector<8x256xf32>
    %252 = arith.mulf %251, %250 : vector<8x256xf32>
    %253 = arith.addf %234, %252 : vector<8x256xf32>
    %254 = vector.broadcast %31 : f32 to vector<8x256xf32>
    %255 = arith.mulf %254, %250 : vector<8x256xf32>
    %256 = arith.addf %237, %255 : vector<8x256xf32>
    %257 = vector.broadcast %58 : f32 to vector<8x256xf32>
    %258 = arith.mulf %257, %250 : vector<8x256xf32>
    %259 = arith.addf %240, %258 : vector<8x256xf32>
    %260 = vector.broadcast %85 : f32 to vector<8x256xf32>
    %261 = arith.mulf %260, %250 : vector<8x256xf32>
    %262 = arith.addf %243, %261 : vector<8x256xf32>
    %263 = vector.broadcast %112 : f32 to vector<8x256xf32>
    %264 = arith.mulf %263, %250 : vector<8x256xf32>
    %265 = arith.addf %246, %264 : vector<8x256xf32>
    %266 = vector.broadcast %139 : f32 to vector<8x256xf32>
    %267 = arith.mulf %266, %250 : vector<8x256xf32>
    %268 = arith.addf %249, %267 : vector<8x256xf32>
    %c238_i32 = arith.constant 238 : i32
    %269 = tpu.dynamic_rotate %174 by %c238_i32 dim 1 : vector<8x256xf32>, i32 -> vector<8x256xf32>
    %270 = vector.broadcast %5 : f32 to vector<8x256xf32>
    %271 = arith.mulf %270, %269 : vector<8x256xf32>
    %272 = arith.addf %253, %271 : vector<8x256xf32>
    %273 = vector.broadcast %32 : f32 to vector<8x256xf32>
    %274 = arith.mulf %273, %269 : vector<8x256xf32>
    %275 = arith.addf %256, %274 : vector<8x256xf32>
    %276 = vector.broadcast %59 : f32 to vector<8x256xf32>
    %277 = arith.mulf %276, %269 : vector<8x256xf32>
    %278 = arith.addf %259, %277 : vector<8x256xf32>
    %279 = vector.broadcast %86 : f32 to vector<8x256xf32>
    %280 = arith.mulf %279, %269 : vector<8x256xf32>
    %281 = arith.addf %262, %280 : vector<8x256xf32>
    %282 = vector.broadcast %113 : f32 to vector<8x256xf32>
    %283 = arith.mulf %282, %269 : vector<8x256xf32>
    %284 = arith.addf %265, %283 : vector<8x256xf32>
    %285 = vector.broadcast %140 : f32 to vector<8x256xf32>
    %286 = arith.mulf %285, %269 : vector<8x256xf32>
    %287 = arith.addf %268, %286 : vector<8x256xf32>
    %c224_i32 = arith.constant 224 : i32
    %288 = tpu.dynamic_rotate %174 by %c224_i32 dim 1 : vector<8x256xf32>, i32 -> vector<8x256xf32>
    %289 = vector.broadcast %6 : f32 to vector<8x256xf32>
    %290 = arith.mulf %289, %288 : vector<8x256xf32>
    %291 = arith.addf %272, %290 : vector<8x256xf32>
    %292 = vector.broadcast %33 : f32 to vector<8x256xf32>
    %293 = arith.mulf %292, %288 : vector<8x256xf32>
    %294 = arith.addf %275, %293 : vector<8x256xf32>
    %295 = vector.broadcast %60 : f32 to vector<8x256xf32>
    %296 = arith.mulf %295, %288 : vector<8x256xf32>
    %297 = arith.addf %278, %296 : vector<8x256xf32>
    %298 = vector.broadcast %87 : f32 to vector<8x256xf32>
    %299 = arith.mulf %298, %288 : vector<8x256xf32>
    %300 = arith.addf %281, %299 : vector<8x256xf32>
    %301 = vector.broadcast %114 : f32 to vector<8x256xf32>
    %302 = arith.mulf %301, %288 : vector<8x256xf32>
    %303 = arith.addf %284, %302 : vector<8x256xf32>
    %304 = vector.broadcast %141 : f32 to vector<8x256xf32>
    %305 = arith.mulf %304, %288 : vector<8x256xf32>
    %306 = arith.addf %287, %305 : vector<8x256xf32>
    %c223_i32 = arith.constant 223 : i32
    %307 = tpu.dynamic_rotate %174 by %c223_i32 dim 1 : vector<8x256xf32>, i32 -> vector<8x256xf32>
    %308 = vector.broadcast %7 : f32 to vector<8x256xf32>
    %309 = arith.mulf %308, %307 : vector<8x256xf32>
    %310 = arith.addf %291, %309 : vector<8x256xf32>
    %311 = vector.broadcast %34 : f32 to vector<8x256xf32>
    %312 = arith.mulf %311, %307 : vector<8x256xf32>
    %313 = arith.addf %294, %312 : vector<8x256xf32>
    %314 = vector.broadcast %61 : f32 to vector<8x256xf32>
    %315 = arith.mulf %314, %307 : vector<8x256xf32>
    %316 = arith.addf %297, %315 : vector<8x256xf32>
    %317 = vector.broadcast %88 : f32 to vector<8x256xf32>
    %318 = arith.mulf %317, %307 : vector<8x256xf32>
    %319 = arith.addf %300, %318 : vector<8x256xf32>
    %320 = vector.broadcast %115 : f32 to vector<8x256xf32>
    %321 = arith.mulf %320, %307 : vector<8x256xf32>
    %322 = arith.addf %303, %321 : vector<8x256xf32>
    %323 = vector.broadcast %142 : f32 to vector<8x256xf32>
    %324 = arith.mulf %323, %307 : vector<8x256xf32>
    %325 = arith.addf %306, %324 : vector<8x256xf32>
    %c222_i32 = arith.constant 222 : i32
    %326 = tpu.dynamic_rotate %174 by %c222_i32 dim 1 : vector<8x256xf32>, i32 -> vector<8x256xf32>
    %327 = vector.broadcast %8 : f32 to vector<8x256xf32>
    %328 = arith.mulf %327, %326 : vector<8x256xf32>
    %329 = arith.addf %310, %328 : vector<8x256xf32>
    %330 = vector.broadcast %35 : f32 to vector<8x256xf32>
    %331 = arith.mulf %330, %326 : vector<8x256xf32>
    %332 = arith.addf %313, %331 : vector<8x256xf32>
    %333 = vector.broadcast %62 : f32 to vector<8x256xf32>
    %334 = arith.mulf %333, %326 : vector<8x256xf32>
    %335 = arith.addf %316, %334 : vector<8x256xf32>
    %336 = vector.broadcast %89 : f32 to vector<8x256xf32>
    %337 = arith.mulf %336, %326 : vector<8x256xf32>
    %338 = arith.addf %319, %337 : vector<8x256xf32>
    %339 = vector.broadcast %116 : f32 to vector<8x256xf32>
    %340 = arith.mulf %339, %326 : vector<8x256xf32>
    %341 = arith.addf %322, %340 : vector<8x256xf32>
    %342 = vector.broadcast %143 : f32 to vector<8x256xf32>
    %343 = arith.mulf %342, %326 : vector<8x256xf32>
    %344 = arith.addf %325, %343 : vector<8x256xf32>
    %c0_8 = arith.constant 0 : index
    %c256 = arith.constant 256 : index
    %345 = vector.load %arg1[%c0_8, %c256] : memref<8x768xf32, #tpu.memory_space<vmem>>, vector<8x256xf32>
    %346 = vector.broadcast %9 : f32 to vector<8x256xf32>
    %347 = arith.mulf %346, %345 : vector<8x256xf32>
    %348 = arith.addf %329, %347 : vector<8x256xf32>
    %349 = vector.broadcast %36 : f32 to vector<8x256xf32>
    %350 = arith.mulf %349, %345 : vector<8x256xf32>
    %351 = arith.addf %332, %350 : vector<8x256xf32>
    %352 = vector.broadcast %63 : f32 to vector<8x256xf32>
    %353 = arith.mulf %352, %345 : vector<8x256xf32>
    %354 = arith.addf %335, %353 : vector<8x256xf32>
    %355 = vector.broadcast %90 : f32 to vector<8x256xf32>
    %356 = arith.mulf %355, %345 : vector<8x256xf32>
    %357 = arith.addf %338, %356 : vector<8x256xf32>
    %358 = vector.broadcast %117 : f32 to vector<8x256xf32>
    %359 = arith.mulf %358, %345 : vector<8x256xf32>
    %360 = arith.addf %341, %359 : vector<8x256xf32>
    %361 = vector.broadcast %144 : f32 to vector<8x256xf32>
    %362 = arith.mulf %361, %345 : vector<8x256xf32>
    %363 = arith.addf %344, %362 : vector<8x256xf32>
    %c255_i32_9 = arith.constant 255 : i32
    %364 = tpu.dynamic_rotate %345 by %c255_i32_9 dim 1 : vector<8x256xf32>, i32 -> vector<8x256xf32>
    %365 = vector.broadcast %10 : f32 to vector<8x256xf32>
    %366 = arith.mulf %365, %364 : vector<8x256xf32>
    %367 = arith.addf %348, %366 : vector<8x256xf32>
    %368 = vector.broadcast %37 : f32 to vector<8x256xf32>
    %369 = arith.mulf %368, %364 : vector<8x256xf32>
    %370 = arith.addf %351, %369 : vector<8x256xf32>
    %371 = vector.broadcast %64 : f32 to vector<8x256xf32>
    %372 = arith.mulf %371, %364 : vector<8x256xf32>
    %373 = arith.addf %354, %372 : vector<8x256xf32>
    %374 = vector.broadcast %91 : f32 to vector<8x256xf32>
    %375 = arith.mulf %374, %364 : vector<8x256xf32>
    %376 = arith.addf %357, %375 : vector<8x256xf32>
    %377 = vector.broadcast %118 : f32 to vector<8x256xf32>
    %378 = arith.mulf %377, %364 : vector<8x256xf32>
    %379 = arith.addf %360, %378 : vector<8x256xf32>
    %380 = vector.broadcast %145 : f32 to vector<8x256xf32>
    %381 = arith.mulf %380, %364 : vector<8x256xf32>
    %382 = arith.addf %363, %381 : vector<8x256xf32>
    %c254_i32_10 = arith.constant 254 : i32
    %383 = tpu.dynamic_rotate %345 by %c254_i32_10 dim 1 : vector<8x256xf32>, i32 -> vector<8x256xf32>
    %384 = vector.broadcast %11 : f32 to vector<8x256xf32>
    %385 = arith.mulf %384, %383 : vector<8x256xf32>
    %386 = arith.addf %367, %385 : vector<8x256xf32>
    %387 = vector.broadcast %38 : f32 to vector<8x256xf32>
    %388 = arith.mulf %387, %383 : vector<8x256xf32>
    %389 = arith.addf %370, %388 : vector<8x256xf32>
    %390 = vector.broadcast %65 : f32 to vector<8x256xf32>
    %391 = arith.mulf %390, %383 : vector<8x256xf32>
    %392 = arith.addf %373, %391 : vector<8x256xf32>
    %393 = vector.broadcast %92 : f32 to vector<8x256xf32>
    %394 = arith.mulf %393, %383 : vector<8x256xf32>
    %395 = arith.addf %376, %394 : vector<8x256xf32>
    %396 = vector.broadcast %119 : f32 to vector<8x256xf32>
    %397 = arith.mulf %396, %383 : vector<8x256xf32>
    %398 = arith.addf %379, %397 : vector<8x256xf32>
    %399 = vector.broadcast %146 : f32 to vector<8x256xf32>
    %400 = arith.mulf %399, %383 : vector<8x256xf32>
    %401 = arith.addf %382, %400 : vector<8x256xf32>
    %c240_i32_11 = arith.constant 240 : i32
    %402 = tpu.dynamic_rotate %345 by %c240_i32_11 dim 1 : vector<8x256xf32>, i32 -> vector<8x256xf32>
    %403 = vector.broadcast %12 : f32 to vector<8x256xf32>
    %404 = arith.mulf %403, %402 : vector<8x256xf32>
    %405 = arith.addf %386, %404 : vector<8x256xf32>
    %406 = vector.broadcast %39 : f32 to vector<8x256xf32>
    %407 = arith.mulf %406, %402 : vector<8x256xf32>
    %408 = arith.addf %389, %407 : vector<8x256xf32>
    %409 = vector.broadcast %66 : f32 to vector<8x256xf32>
    %410 = arith.mulf %409, %402 : vector<8x256xf32>
    %411 = arith.addf %392, %410 : vector<8x256xf32>
    %412 = vector.broadcast %93 : f32 to vector<8x256xf32>
    %413 = arith.mulf %412, %402 : vector<8x256xf32>
    %414 = arith.addf %395, %413 : vector<8x256xf32>
    %415 = vector.broadcast %120 : f32 to vector<8x256xf32>
    %416 = arith.mulf %415, %402 : vector<8x256xf32>
    %417 = arith.addf %398, %416 : vector<8x256xf32>
    %418 = vector.broadcast %147 : f32 to vector<8x256xf32>
    %419 = arith.mulf %418, %402 : vector<8x256xf32>
    %420 = arith.addf %401, %419 : vector<8x256xf32>
    %c239_i32_12 = arith.constant 239 : i32
    %421 = tpu.dynamic_rotate %345 by %c239_i32_12 dim 1 : vector<8x256xf32>, i32 -> vector<8x256xf32>
    %422 = vector.broadcast %13 : f32 to vector<8x256xf32>
    %423 = arith.mulf %422, %421 : vector<8x256xf32>
    %424 = arith.addf %405, %423 : vector<8x256xf32>
    %425 = vector.broadcast %40 : f32 to vector<8x256xf32>
    %426 = arith.mulf %425, %421 : vector<8x256xf32>
    %427 = arith.addf %408, %426 : vector<8x256xf32>
    %428 = vector.broadcast %67 : f32 to vector<8x256xf32>
    %429 = arith.mulf %428, %421 : vector<8x256xf32>
    %430 = arith.addf %411, %429 : vector<8x256xf32>
    %431 = vector.broadcast %94 : f32 to vector<8x256xf32>
    %432 = arith.mulf %431, %421 : vector<8x256xf32>
    %433 = arith.addf %414, %432 : vector<8x256xf32>
    %434 = vector.broadcast %121 : f32 to vector<8x256xf32>
    %435 = arith.mulf %434, %421 : vector<8x256xf32>
    %436 = arith.addf %417, %435 : vector<8x256xf32>
    %437 = vector.broadcast %148 : f32 to vector<8x256xf32>
    %438 = arith.mulf %437, %421 : vector<8x256xf32>
    %439 = arith.addf %420, %438 : vector<8x256xf32>
    %c238_i32_13 = arith.constant 238 : i32
    %440 = tpu.dynamic_rotate %345 by %c238_i32_13 dim 1 : vector<8x256xf32>, i32 -> vector<8x256xf32>
    %441 = vector.broadcast %14 : f32 to vector<8x256xf32>
    %442 = arith.mulf %441, %440 : vector<8x256xf32>
    %443 = arith.addf %424, %442 : vector<8x256xf32>
    %444 = vector.broadcast %41 : f32 to vector<8x256xf32>
    %445 = arith.mulf %444, %440 : vector<8x256xf32>
    %446 = arith.addf %427, %445 : vector<8x256xf32>
    %447 = vector.broadcast %68 : f32 to vector<8x256xf32>
    %448 = arith.mulf %447, %440 : vector<8x256xf32>
    %449 = arith.addf %430, %448 : vector<8x256xf32>
    %450 = vector.broadcast %95 : f32 to vector<8x256xf32>
    %451 = arith.mulf %450, %440 : vector<8x256xf32>
    %452 = arith.addf %433, %451 : vector<8x256xf32>
    %453 = vector.broadcast %122 : f32 to vector<8x256xf32>
    %454 = arith.mulf %453, %440 : vector<8x256xf32>
    %455 = arith.addf %436, %454 : vector<8x256xf32>
    %456 = vector.broadcast %149 : f32 to vector<8x256xf32>
    %457 = arith.mulf %456, %440 : vector<8x256xf32>
    %458 = arith.addf %439, %457 : vector<8x256xf32>
    %c224_i32_14 = arith.constant 224 : i32
    %459 = tpu.dynamic_rotate %345 by %c224_i32_14 dim 1 : vector<8x256xf32>, i32 -> vector<8x256xf32>
    %460 = vector.broadcast %15 : f32 to vector<8x256xf32>
    %461 = arith.mulf %460, %459 : vector<8x256xf32>
    %462 = arith.addf %443, %461 : vector<8x256xf32>
    %463 = vector.broadcast %42 : f32 to vector<8x256xf32>
    %464 = arith.mulf %463, %459 : vector<8x256xf32>
    %465 = arith.addf %446, %464 : vector<8x256xf32>
    %466 = vector.broadcast %69 : f32 to vector<8x256xf32>
    %467 = arith.mulf %466, %459 : vector<8x256xf32>
    %468 = arith.addf %449, %467 : vector<8x256xf32>
    %469 = vector.broadcast %96 : f32 to vector<8x256xf32>
    %470 = arith.mulf %469, %459 : vector<8x256xf32>
    %471 = arith.addf %452, %470 : vector<8x256xf32>
    %472 = vector.broadcast %123 : f32 to vector<8x256xf32>
    %473 = arith.mulf %472, %459 : vector<8x256xf32>
    %474 = arith.addf %455, %473 : vector<8x256xf32>
    %475 = vector.broadcast %150 : f32 to vector<8x256xf32>
    %476 = arith.mulf %475, %459 : vector<8x256xf32>
    %477 = arith.addf %458, %476 : vector<8x256xf32>
    %c223_i32_15 = arith.constant 223 : i32
    %478 = tpu.dynamic_rotate %345 by %c223_i32_15 dim 1 : vector<8x256xf32>, i32 -> vector<8x256xf32>
    %479 = vector.broadcast %16 : f32 to vector<8x256xf32>
    %480 = arith.mulf %479, %478 : vector<8x256xf32>
    %481 = arith.addf %462, %480 : vector<8x256xf32>
    %482 = vector.broadcast %43 : f32 to vector<8x256xf32>
    %483 = arith.mulf %482, %478 : vector<8x256xf32>
    %484 = arith.addf %465, %483 : vector<8x256xf32>
    %485 = vector.broadcast %70 : f32 to vector<8x256xf32>
    %486 = arith.mulf %485, %478 : vector<8x256xf32>
    %487 = arith.addf %468, %486 : vector<8x256xf32>
    %488 = vector.broadcast %97 : f32 to vector<8x256xf32>
    %489 = arith.mulf %488, %478 : vector<8x256xf32>
    %490 = arith.addf %471, %489 : vector<8x256xf32>
    %491 = vector.broadcast %124 : f32 to vector<8x256xf32>
    %492 = arith.mulf %491, %478 : vector<8x256xf32>
    %493 = arith.addf %474, %492 : vector<8x256xf32>
    %494 = vector.broadcast %151 : f32 to vector<8x256xf32>
    %495 = arith.mulf %494, %478 : vector<8x256xf32>
    %496 = arith.addf %477, %495 : vector<8x256xf32>
    %c222_i32_16 = arith.constant 222 : i32
    %497 = tpu.dynamic_rotate %345 by %c222_i32_16 dim 1 : vector<8x256xf32>, i32 -> vector<8x256xf32>
    %498 = vector.broadcast %17 : f32 to vector<8x256xf32>
    %499 = arith.mulf %498, %497 : vector<8x256xf32>
    %500 = arith.addf %481, %499 : vector<8x256xf32>
    %501 = vector.broadcast %44 : f32 to vector<8x256xf32>
    %502 = arith.mulf %501, %497 : vector<8x256xf32>
    %503 = arith.addf %484, %502 : vector<8x256xf32>
    %504 = vector.broadcast %71 : f32 to vector<8x256xf32>
    %505 = arith.mulf %504, %497 : vector<8x256xf32>
    %506 = arith.addf %487, %505 : vector<8x256xf32>
    %507 = vector.broadcast %98 : f32 to vector<8x256xf32>
    %508 = arith.mulf %507, %497 : vector<8x256xf32>
    %509 = arith.addf %490, %508 : vector<8x256xf32>
    %510 = vector.broadcast %125 : f32 to vector<8x256xf32>
    %511 = arith.mulf %510, %497 : vector<8x256xf32>
    %512 = arith.addf %493, %511 : vector<8x256xf32>
    %513 = vector.broadcast %152 : f32 to vector<8x256xf32>
    %514 = arith.mulf %513, %497 : vector<8x256xf32>
    %515 = arith.addf %496, %514 : vector<8x256xf32>
    %c0_17 = arith.constant 0 : index
    %c512 = arith.constant 512 : index
    %516 = vector.load %arg1[%c0_17, %c512] : memref<8x768xf32, #tpu.memory_space<vmem>>, vector<8x256xf32>
    %517 = vector.broadcast %18 : f32 to vector<8x256xf32>
    %518 = arith.mulf %517, %516 : vector<8x256xf32>
    %519 = arith.addf %500, %518 : vector<8x256xf32>
    %520 = vector.broadcast %45 : f32 to vector<8x256xf32>
    %521 = arith.mulf %520, %516 : vector<8x256xf32>
    %522 = arith.addf %503, %521 : vector<8x256xf32>
    %523 = vector.broadcast %72 : f32 to vector<8x256xf32>
    %524 = arith.mulf %523, %516 : vector<8x256xf32>
    %525 = arith.addf %506, %524 : vector<8x256xf32>
    %526 = vector.broadcast %99 : f32 to vector<8x256xf32>
    %527 = arith.mulf %526, %516 : vector<8x256xf32>
    %528 = arith.addf %509, %527 : vector<8x256xf32>
    %529 = vector.broadcast %126 : f32 to vector<8x256xf32>
    %530 = arith.mulf %529, %516 : vector<8x256xf32>
    %531 = arith.addf %512, %530 : vector<8x256xf32>
    %532 = vector.broadcast %153 : f32 to vector<8x256xf32>
    %533 = arith.mulf %532, %516 : vector<8x256xf32>
    %534 = arith.addf %515, %533 : vector<8x256xf32>
    %c255_i32_18 = arith.constant 255 : i32
    %535 = tpu.dynamic_rotate %516 by %c255_i32_18 dim 1 : vector<8x256xf32>, i32 -> vector<8x256xf32>
    %536 = vector.broadcast %19 : f32 to vector<8x256xf32>
    %537 = arith.mulf %536, %535 : vector<8x256xf32>
    %538 = arith.addf %519, %537 : vector<8x256xf32>
    %539 = vector.broadcast %46 : f32 to vector<8x256xf32>
    %540 = arith.mulf %539, %535 : vector<8x256xf32>
    %541 = arith.addf %522, %540 : vector<8x256xf32>
    %542 = vector.broadcast %73 : f32 to vector<8x256xf32>
    %543 = arith.mulf %542, %535 : vector<8x256xf32>
    %544 = arith.addf %525, %543 : vector<8x256xf32>
    %545 = vector.broadcast %100 : f32 to vector<8x256xf32>
    %546 = arith.mulf %545, %535 : vector<8x256xf32>
    %547 = arith.addf %528, %546 : vector<8x256xf32>
    %548 = vector.broadcast %127 : f32 to vector<8x256xf32>
    %549 = arith.mulf %548, %535 : vector<8x256xf32>
    %550 = arith.addf %531, %549 : vector<8x256xf32>
    %551 = vector.broadcast %154 : f32 to vector<8x256xf32>
    %552 = arith.mulf %551, %535 : vector<8x256xf32>
    %553 = arith.addf %534, %552 : vector<8x256xf32>
    %c254_i32_19 = arith.constant 254 : i32
    %554 = tpu.dynamic_rotate %516 by %c254_i32_19 dim 1 : vector<8x256xf32>, i32 -> vector<8x256xf32>
    %555 = vector.broadcast %20 : f32 to vector<8x256xf32>
    %556 = arith.mulf %555, %554 : vector<8x256xf32>
    %557 = arith.addf %538, %556 : vector<8x256xf32>
    %558 = vector.broadcast %47 : f32 to vector<8x256xf32>
    %559 = arith.mulf %558, %554 : vector<8x256xf32>
    %560 = arith.addf %541, %559 : vector<8x256xf32>
    %561 = vector.broadcast %74 : f32 to vector<8x256xf32>
    %562 = arith.mulf %561, %554 : vector<8x256xf32>
    %563 = arith.addf %544, %562 : vector<8x256xf32>
    %564 = vector.broadcast %101 : f32 to vector<8x256xf32>
    %565 = arith.mulf %564, %554 : vector<8x256xf32>
    %566 = arith.addf %547, %565 : vector<8x256xf32>
    %567 = vector.broadcast %128 : f32 to vector<8x256xf32>
    %568 = arith.mulf %567, %554 : vector<8x256xf32>
    %569 = arith.addf %550, %568 : vector<8x256xf32>
    %570 = vector.broadcast %155 : f32 to vector<8x256xf32>
    %571 = arith.mulf %570, %554 : vector<8x256xf32>
    %572 = arith.addf %553, %571 : vector<8x256xf32>
    %c240_i32_20 = arith.constant 240 : i32
    %573 = tpu.dynamic_rotate %516 by %c240_i32_20 dim 1 : vector<8x256xf32>, i32 -> vector<8x256xf32>
    %574 = vector.broadcast %21 : f32 to vector<8x256xf32>
    %575 = arith.mulf %574, %573 : vector<8x256xf32>
    %576 = arith.addf %557, %575 : vector<8x256xf32>
    %577 = vector.broadcast %48 : f32 to vector<8x256xf32>
    %578 = arith.mulf %577, %573 : vector<8x256xf32>
    %579 = arith.addf %560, %578 : vector<8x256xf32>
    %580 = vector.broadcast %75 : f32 to vector<8x256xf32>
    %581 = arith.mulf %580, %573 : vector<8x256xf32>
    %582 = arith.addf %563, %581 : vector<8x256xf32>
    %583 = vector.broadcast %102 : f32 to vector<8x256xf32>
    %584 = arith.mulf %583, %573 : vector<8x256xf32>
    %585 = arith.addf %566, %584 : vector<8x256xf32>
    %586 = vector.broadcast %129 : f32 to vector<8x256xf32>
    %587 = arith.mulf %586, %573 : vector<8x256xf32>
    %588 = arith.addf %569, %587 : vector<8x256xf32>
    %589 = vector.broadcast %156 : f32 to vector<8x256xf32>
    %590 = arith.mulf %589, %573 : vector<8x256xf32>
    %591 = arith.addf %572, %590 : vector<8x256xf32>
    %c239_i32_21 = arith.constant 239 : i32
    %592 = tpu.dynamic_rotate %516 by %c239_i32_21 dim 1 : vector<8x256xf32>, i32 -> vector<8x256xf32>
    %593 = vector.broadcast %22 : f32 to vector<8x256xf32>
    %594 = arith.mulf %593, %592 : vector<8x256xf32>
    %595 = arith.addf %576, %594 : vector<8x256xf32>
    %596 = vector.broadcast %49 : f32 to vector<8x256xf32>
    %597 = arith.mulf %596, %592 : vector<8x256xf32>
    %598 = arith.addf %579, %597 : vector<8x256xf32>
    %599 = vector.broadcast %76 : f32 to vector<8x256xf32>
    %600 = arith.mulf %599, %592 : vector<8x256xf32>
    %601 = arith.addf %582, %600 : vector<8x256xf32>
    %602 = vector.broadcast %103 : f32 to vector<8x256xf32>
    %603 = arith.mulf %602, %592 : vector<8x256xf32>
    %604 = arith.addf %585, %603 : vector<8x256xf32>
    %605 = vector.broadcast %130 : f32 to vector<8x256xf32>
    %606 = arith.mulf %605, %592 : vector<8x256xf32>
    %607 = arith.addf %588, %606 : vector<8x256xf32>
    %608 = vector.broadcast %157 : f32 to vector<8x256xf32>
    %609 = arith.mulf %608, %592 : vector<8x256xf32>
    %610 = arith.addf %591, %609 : vector<8x256xf32>
    %c238_i32_22 = arith.constant 238 : i32
    %611 = tpu.dynamic_rotate %516 by %c238_i32_22 dim 1 : vector<8x256xf32>, i32 -> vector<8x256xf32>
    %612 = vector.broadcast %23 : f32 to vector<8x256xf32>
    %613 = arith.mulf %612, %611 : vector<8x256xf32>
    %614 = arith.addf %595, %613 : vector<8x256xf32>
    %615 = vector.broadcast %50 : f32 to vector<8x256xf32>
    %616 = arith.mulf %615, %611 : vector<8x256xf32>
    %617 = arith.addf %598, %616 : vector<8x256xf32>
    %618 = vector.broadcast %77 : f32 to vector<8x256xf32>
    %619 = arith.mulf %618, %611 : vector<8x256xf32>
    %620 = arith.addf %601, %619 : vector<8x256xf32>
    %621 = vector.broadcast %104 : f32 to vector<8x256xf32>
    %622 = arith.mulf %621, %611 : vector<8x256xf32>
    %623 = arith.addf %604, %622 : vector<8x256xf32>
    %624 = vector.broadcast %131 : f32 to vector<8x256xf32>
    %625 = arith.mulf %624, %611 : vector<8x256xf32>
    %626 = arith.addf %607, %625 : vector<8x256xf32>
    %627 = vector.broadcast %158 : f32 to vector<8x256xf32>
    %628 = arith.mulf %627, %611 : vector<8x256xf32>
    %629 = arith.addf %610, %628 : vector<8x256xf32>
    %c224_i32_23 = arith.constant 224 : i32
    %630 = tpu.dynamic_rotate %516 by %c224_i32_23 dim 1 : vector<8x256xf32>, i32 -> vector<8x256xf32>
    %631 = vector.broadcast %24 : f32 to vector<8x256xf32>
    %632 = arith.mulf %631, %630 : vector<8x256xf32>
    %633 = arith.addf %614, %632 : vector<8x256xf32>
    %634 = vector.broadcast %51 : f32 to vector<8x256xf32>
    %635 = arith.mulf %634, %630 : vector<8x256xf32>
    %636 = arith.addf %617, %635 : vector<8x256xf32>
    %637 = vector.broadcast %78 : f32 to vector<8x256xf32>
    %638 = arith.mulf %637, %630 : vector<8x256xf32>
    %639 = arith.addf %620, %638 : vector<8x256xf32>
    %640 = vector.broadcast %105 : f32 to vector<8x256xf32>
    %641 = arith.mulf %640, %630 : vector<8x256xf32>
    %642 = arith.addf %623, %641 : vector<8x256xf32>
    %643 = vector.broadcast %132 : f32 to vector<8x256xf32>
    %644 = arith.mulf %643, %630 : vector<8x256xf32>
    %645 = arith.addf %626, %644 : vector<8x256xf32>
    %646 = vector.broadcast %159 : f32 to vector<8x256xf32>
    %647 = arith.mulf %646, %630 : vector<8x256xf32>
    %648 = arith.addf %629, %647 : vector<8x256xf32>
    %c223_i32_24 = arith.constant 223 : i32
    %649 = tpu.dynamic_rotate %516 by %c223_i32_24 dim 1 : vector<8x256xf32>, i32 -> vector<8x256xf32>
    %650 = vector.broadcast %25 : f32 to vector<8x256xf32>
    %651 = arith.mulf %650, %649 : vector<8x256xf32>
    %652 = arith.addf %633, %651 : vector<8x256xf32>
    %653 = vector.broadcast %52 : f32 to vector<8x256xf32>
    %654 = arith.mulf %653, %649 : vector<8x256xf32>
    %655 = arith.addf %636, %654 : vector<8x256xf32>
    %656 = vector.broadcast %79 : f32 to vector<8x256xf32>
    %657 = arith.mulf %656, %649 : vector<8x256xf32>
    %658 = arith.addf %639, %657 : vector<8x256xf32>
    %659 = vector.broadcast %106 : f32 to vector<8x256xf32>
    %660 = arith.mulf %659, %649 : vector<8x256xf32>
    %661 = arith.addf %642, %660 : vector<8x256xf32>
    %662 = vector.broadcast %133 : f32 to vector<8x256xf32>
    %663 = arith.mulf %662, %649 : vector<8x256xf32>
    %664 = arith.addf %645, %663 : vector<8x256xf32>
    %665 = vector.broadcast %160 : f32 to vector<8x256xf32>
    %666 = arith.mulf %665, %649 : vector<8x256xf32>
    %667 = arith.addf %648, %666 : vector<8x256xf32>
    %c222_i32_25 = arith.constant 222 : i32
    %668 = tpu.dynamic_rotate %516 by %c222_i32_25 dim 1 : vector<8x256xf32>, i32 -> vector<8x256xf32>
    %669 = vector.broadcast %26 : f32 to vector<8x256xf32>
    %670 = arith.mulf %669, %668 : vector<8x256xf32>
    %671 = arith.addf %652, %670 : vector<8x256xf32>
    %672 = vector.broadcast %53 : f32 to vector<8x256xf32>
    %673 = arith.mulf %672, %668 : vector<8x256xf32>
    %674 = arith.addf %655, %673 : vector<8x256xf32>
    %675 = vector.broadcast %80 : f32 to vector<8x256xf32>
    %676 = arith.mulf %675, %668 : vector<8x256xf32>
    %677 = arith.addf %658, %676 : vector<8x256xf32>
    %678 = vector.broadcast %107 : f32 to vector<8x256xf32>
    %679 = arith.mulf %678, %668 : vector<8x256xf32>
    %680 = arith.addf %661, %679 : vector<8x256xf32>
    %681 = vector.broadcast %134 : f32 to vector<8x256xf32>
    %682 = arith.mulf %681, %668 : vector<8x256xf32>
    %683 = arith.addf %664, %682 : vector<8x256xf32>
    %684 = vector.broadcast %161 : f32 to vector<8x256xf32>
    %685 = arith.mulf %684, %668 : vector<8x256xf32>
    %686 = arith.addf %667, %685 : vector<8x256xf32>
    %c0_26 = arith.constant 0 : index
    %c0_27 = arith.constant 0 : index
    %687 = vector.load %arg4[%c0_26, %c0_27] : memref<8x1536xf32, #tpu.memory_space<vmem>>, vector<8x256xf32>
    tpu.vector_store %arg4[%c0_26, %c0_27], %671 {strides = array<i32>} : memref<8x1536xf32, #tpu.memory_space<vmem>>, vector<8x256xf32>,
    %c0_28 = arith.constant 0 : index
    %c256_29 = arith.constant 256 : index
    %688 = vector.load %arg4[%c0_28, %c256_29] : memref<8x1536xf32, #tpu.memory_space<vmem>>, vector<8x256xf32>
    tpu.vector_store %arg4[%c0_28, %c256_29], %674 {strides = array<i32>} : memref<8x1536xf32, #tpu.memory_space<vmem>>, vector<8x256xf32>,
    %c0_30 = arith.constant 0 : index
    %c512_31 = arith.constant 512 : index
    %689 = vector.load %arg4[%c0_30, %c512_31] : memref<8x1536xf32, #tpu.memory_space<vmem>>, vector<8x256xf32>
    tpu.vector_store %arg4[%c0_30, %c512_31], %677 {strides = array<i32>} : memref<8x1536xf32, #tpu.memory_space<vmem>>, vector<8x256xf32>,
    %c0_32 = arith.constant 0 : index
    %c768 = arith.constant 768 : index
    %690 = vector.load %arg4[%c0_32, %c768] : memref<8x1536xf32, #tpu.memory_space<vmem>>, vector<8x256xf32>
    tpu.vector_store %arg4[%c0_32, %c768], %680 {strides = array<i32>} : memref<8x1536xf32, #tpu.memory_space<vmem>>, vector<8x256xf32>,
    %c0_33 = arith.constant 0 : index
    %c1024 = arith.constant 1024 : index
    %691 = vector.load %arg4[%c0_33, %c1024] : memref<8x1536xf32, #tpu.memory_space<vmem>>, vector<8x256xf32>
    tpu.vector_store %arg4[%c0_33, %c1024], %683 {strides = array<i32>} : memref<8x1536xf32, #tpu.memory_space<vmem>>, vector<8x256xf32>,
    %c0_34 = arith.constant 0 : index
    %c1280 = arith.constant 1280 : index
    %692 = vector.load %arg4[%c0_34, %c1280] : memref<8x1536xf32, #tpu.memory_space<vmem>>, vector<8x256xf32>
    tpu.vector_store %arg4[%c0_34, %c1280], %686 {strides = array<i32>} : memref<8x1536xf32, #tpu.memory_space<vmem>>, vector<8x256xf32>,
    return
  }
  func.func @transform_0(%arg0: i32) -> (i32, i32) {
    %c0_i32 = arith.constant 0 : i32
    %c0_i32_0 = arith.constant 0 : i32
    return %arg0, %c0_i32 : i32, i32
  }
  func.func @transform_1(%arg0: i32) -> i32 {
    %c0_i32 = arith.constant 0 : i32
    %c0_i32_0 = arith.constant 0 : i32
    return %c0_i32 : i32
  }
  func.func @transform_2(%arg0: i32) -> i32 {
    %c0_i32 = arith.constant 0 : i32
    %c0_i32_0 = arith.constant 0 : i32
    return %c0_i32 : i32
  }
  func.func @transform_3(%arg0: i32) -> (i32, i32) {
    %c0_i32 = arith.constant 0 : i32
    %c0_i32_0 = arith.constant 0 : i32
    return %arg0, %c0_i32 : i32, i32
  }
}

</mosaic_0001>

<bundles_post_ra>
// kernel: tpu_custom_call.1
= control target key start
LH: loop header
LB: loop body
LE: loop exit
PB: predicated region body
PF: predicated region fallthrough
CT: control target
= control target key end

     0   :  { %s3018_s0 = inlined_call_operand.hbm [shape: f32[16,768], index: 0, kind: input, shape index: {}]   ;;  %s3019_s1 = inlined_call_operand.hbm [shape: f32[162], index: 1, kind: input, shape index: {}]   ;;  %s3020_s2 = inlined_call_operand.vmem [shape: f32[6], index: 2, kind: input, shape index: {}]   ;;  %s3021_s3 = inlined_call_operand.hbm [shape: f32[16,1536], index: 3, kind: output, shape index: {}]  }
   0x1   :  { %3049 = sst [smem:[#allocation28_spill]] %s3018_s0 }
   0x2   :  { %3050 = sst [smem:[#allocation29_spill]] %s3019_s1 }
   0x3   :  { %3051 = sst [smem:[#allocation30_spill]] %s3020_s2 }
   0x4   :  { %3052 = sst [smem:[#allocation31_spill]] %s3021_s3 }
   0x5   :  { %8 = vsyncpa [#allocation3], 0 }
   0x6   :  { %10 = vsyncpa [#allocation3 + $0x1], 0 }
   0x7   :  { %11 = vsyncpa [#allocation5], 0 }
   0x8   :  { %12 = vsyncpa [#allocation6], 0 }
   0x9   :  { %13 = vsyncpa [#allocation4], 0 }
   0xa   :  { %15 = vsyncpa [#allocation4 + $0x1], 0  ;;  %s1909_s12 = smov 0   ;;  %s1911_s13 = smov 0  }
   0xb   :  { %s1913_s14 = smov 0   ;;  %s1915_s15 = smov 0  }
   0xc LB: > { %3053 = sst [smem:[#allocation14_spill]] %s1865_s12  ;;  %s1930_s16 = sadd.s32 4294967295, %s1877_s15   ;;  %s1877_s15 = sphi %s1915_s15, %s3109_s15   ;;  %s1873_s14 = sphi %s1913_s14, %s3112_s14   ;;  %s1869_s13 = sphi %s1911_s13, %s3111_s13   ;;  %s1865_s12 = sphi %s1909_s12, %s3110_s12  }
   0xd   : > { %3054 = sst [smem:[#allocation15_spill]] %s1869_s13  ;;  %s1483_s17 = sadd.s32 4294967294, %s1877_s15  }
   0xe   : > { %3055 = sst [smem:[#allocation16_spill]] %s1873_s14  ;;  %p41_p0 = scmp.ne.s32.totalorder %s1869_s13, %s1865_s12 }
   0xf   : > { %3056 = sst [smem:[#allocation17_spill]] %s1877_s15  ;;  %p42_p1 = scmp.eq.s32.totalorder %s1930_s16, 0 }
  0x10   : > { %3057 = sst [smem:[#allocation18_spill]] %s1930_s16  ;;  %p107_p2 = scmp.eq.s32.totalorder %s1930_s16, 1 }
  0x11   : > { %p113_p3 = scmp.eq.s32.totalorder %s1483_s17, 1  ;;  %p1939_p4 = por %p42_p1, %p41_p0 }
  0x12   : > { %p1484_p5 = scmp.ge.s32.totalorder %s1877_s15, 1  ;;  %p120_p7 = scmp.lt.s32.totalorder %s1877_s15, 3 }
  0x13   : > { %p1944_p6 = por %p113_p3, %p41_p0  ;;  %s3061_s1 = sld [smem:[#allocation29_spill]] }
  0x14   : > { %p1952_p8 = pnand %p1484_p5, %p120_p7  ;;  %s3063_s2 = sld [smem:[#allocation30_spill]] }
  0x15   : > { %s3059_s19 = scalar_select %p1944_p6, 1, 0 }
  0x16   : > { %p1678_p10 = pneg %p1952_p8  ;;  %s1965_s27 = sadd.s32 1, %s1877_s15  }
  0x17   : > { %3060 = sst [smem:[#allocation19_spill]] %s3059_s19  ;;  %s25_s28 = ssub.s32 %s1877_s15, %s1965_s27 }
  0x18   : > { %p1679_p11 = pnand %p1678_p10, %p42_p1  ;;  %3064 = sst [smem:[#allocation20_spill]] %s1965_s27 }
  0x19   : > { %s132_s22 = sshll.u32 %s3061_s1, 4  ;;  %s1879_s29 = smov [#allocation7]   ;;  %s133_s22 = int_to_ptr.hbm [resolvable:$true] %s132_s22 }
  0x1a   : > { %s142_s26 = sshll.u32 %s3063_s2, 4  ;;  %s1880_s30 = smov [#allocation8]   ;;  %s143_s26 = int_to_ptr.vmem [resolvable:$true] %s142_s26 }
  0x1b   : > { %1681 = dma.hbm_to_smem (!%p1679_p11), %s133_s22, 32, %s1879_s29, [#allocation5]  }
  0x1c   : > { %1684 = dma.vmem_to_smem (!%p1679_p11), %s143_s26, 16, %s1880_s30, [#allocation6]  }
  0x1d   : > { %p26_p12 = scmp.eq.s32.totalorder %s25_s28, 0  ;;  %s28_s4 = sadd.s32 1, %s1873_s14 }
  0x1e   : > { %p35_p13 = scmp.ne.s32.totalorder %s1873_s14, %s1869_s13  ;;  %p36_p0 = scmp.eq.s32.totalorder %s1877_s15, 0 }
  0x1f   : > { %s1974_s5 = scalar_select %p26_p12, %s1873_s14, %s28_s4  }
  0x20   : > { %p37_p3 = por %p36_p0, %p35_p13  ;;  %p1978_p5 = por %p107_p2, %p35_p13 }
  0x21   : > { %3065 = sst [smem:[#allocation21_spill]] %s1974_s5  ;;  %p1695_p7 = scmp.lt.s32.totalorder %s1877_s15, 2 }
  0x22   : > { %s3066_s6 = scalar_select %p1978_p5, 1, 0 }
  0x23   : > { %s153_s7 = sand.u32 1, %s1873_s14   ;;  %s1662_s9 = smul.u32 48, %s1877_s15 }
  0x24   : > { %3067 = sst [smem:[#allocation22_spill]] %s3066_s6  ;;  %s1661_s8 = smul.u32 48, %s153_s7 }
  0x25   : > { %p1985_p10 = pnand %p1695_p7, %p37_p3  ;;  %s3069_s0 = sld [smem:[#allocation28_spill]] }
  0x26   : > { %s157_s21 = scalar_lea.vmem [#allocation2], %s1661_s8  ;;  %s154_s25 = scalar_lea.sflag [#allocation3], %s153_s7 }
  0x27   : > { %s166_s22 = sshll.u32 %s157_s21, 4  ;;  %p1777_p11 = pneg %p1985_p10  ;;  %s167_s22 = int_to_ptr.vmem [resolvable:$true] %s166_s22 }
  0x2b   : > { %s162_s20 = scalar_lea.hbm %s3069_s0, %s1662_s9  ;;  %s1780_s4 = scalar_lea.hbm %s3069_s0, 96 }
  0x2c   : > { %s164_s24 = sshll.u32 %s162_s20, 4  ;;  %s165_s24 = int_to_ptr.hbm [resolvable:$true] %s164_s24 }
  0x2d   : > { %s1773_s26 = sshra.s32 %s165_s24, 4  ;;  %s1774_s26 = int_to_ptr.hbm [resolvable:$true] %s1773_s26 }
  0x2e   : > { %s1775_s28 = scalar_lea.hbm %s1774_s26, 48  ;;  %p1781_p0 = scmp.lt.s32.totalorder %s1774_s26, %s3069_s0 }
  0x2f   : > { %p1776_p2 = scmp.ne.s32.totalorder %s1774_s26, %s1775_s28  ;;  %p1782_p3 = scmp.lt.s32.totalorder %s1780_s4, %s1775_s28 }
  0x31   : > { %p1778_p12 = pnand %p1777_p11, %p1776_p2  ;;  %p1783_p7 = por %p1782_p3, %p1781_p0 }
  0x33   : > { %p1779_p13 = pneg %p1778_p12 }
  0x35   : > { %p1784_p9 = pnand %p1783_p7, %p1779_p13 }
  0x37   : > { %1787 = shalt.err (!%p1784_p9)
}
  0x38   : > { %1688 = dma.hbm_to_vmem [thread:$0]  (!%p1985_p10), %s165_s24, 768, %s167_s22, %s154_s25  }
  0x39   : > { %175 = sbr.rel (%p1952_p8) target bundleno = 407 (0x197), region = 32 }
  0x3e   : > { %s2005_s7 = sand.u32 1, %s1869_s13  }
  0x3f   : > { %3070 = sst [smem:[#allocation23_spill]] %s2005_s7  ;;  %s1663_s8 = smul.u32 48, %s2005_s7 }
  0x40   : > { %s178_s17 = scalar_lea.sflag [#allocation3], %s2005_s7 }
  0x41   : > { %s2009_s20 = scalar_lea.vmem [#allocation2], %s1663_s8 }
  0x42   : > { %3071 = sst [smem:[#allocation24_spill]] %s2009_s20 }
  0x43   : > { %1848 = dma.done.wait (%p1939_p4), %s178_s17, 768  }
  0x44   : > { %1850 = vsyncadd (%p1939_p4), %s178_s17, 4294966528 }
  0x45   : > { %1852 = dma.done.wait (%p42_p1), [#allocation5], 32  }
  0x46   : > { %1854 = vsyncadd (%p42_p1), [#allocation5], 4294967264 }
  0x47   : > { %1856 = dma.done.wait (%p42_p1), [#allocation6], 16  }
  0x48   : > { %1858 = vsyncadd (%p42_p1), [#allocation6], 4294967280 }
  0x49   : > { %197 = sfence }
  0x4a   : > { %v2024_v0 = vld [vmem:[%s2009_s20] sm:$0xff]  ;;  %s1881_s23 = smov 126   ;;  %s1882_s18 = smov 127   ;;  %v2033_v1 = vld [vmem:[%s2009_s20 + $0x8] sm:$0xff]  ;;  %v2060_v2 = vld [vmem:[%s2009_s20 + $0x10] sm:$0xff]  ;;  %v426_v6 = vlaneseq }
  0x4b   : > { %461 = vrot.lane.b32.xlu1 %v2024_v0, %s1881_s23  ;;  %422 = vrot.lane.b32.xlu0 %v2024_v0, %s1882_s18  ;;  %s3032_s10 = smov 112   ;;  %s3028_s21 = smov 111   ;;  %v2067_v3 = vld [vmem:[%s2009_s20 + $0x18] sm:$0xff]  ;;  %v2112_v4 = vld [vmem:[%s2009_s20 + $0x20] sm:$0xff] }
  0x4c   : > { %498 = vrot.lane.b32.xlu2 %v2024_v0, %s3032_s10  ;;  %s3026_s22 = smov 110   ;;  %s3024_s24 = smov 96   ;;  %v2127_v5 = vld [vmem:[%s2009_s20 + $0x28] sm:$0xff]  ;;  %v2151_v8 = vand.u32 127, %v426_v6 }
  0x4d   : > { %s3022_s25 = smov 95   ;;  %s3030_s26 = smov 94  }
  0x4e   : > { %s2095_s28 = sld [smem:[#allocation7 + $0x3]]  ;;  %vm502_vm0 = vcmp.lt.s32.totalorder %v2151_v8, 112  ;;  %s3075_s19 = smov 111   ;;  %vm465_vm1 = vcmp.lt.s32.totalorder %v2151_v8, 126  ;;  %vm428_vm2 = vcmp.lt.s32.totalorder %v2151_v8, 127  ;;  %vm539_vm3 = vcmp.lt.s32.totalorder %v2151_v8, 111 }
  0x4f   : > { %s2097_s29 = sld [smem:[#allocation7 + $0x1e]]  ;;  %vm576_vm4 = vcmp.lt.s32.totalorder %v2151_v8, 110  ;;  %vm613_vm5 = vcmp.lt.s32.totalorder %v2151_v8, 96  ;;  %vm650_vm6 = vcmp.lt.s32.totalorder %v2151_v8, 95  ;;  %vm687_vm7 = vcmp.lt.s32.totalorder %v2151_v8, 94 }
  0x50   : > { %s2099_s30 = sld [smem:[#allocation7 + $0x39]] }
  0x51   : > { %s2101_s4 = sld [smem:[#allocation7 + $0x54]] }
  0x52   : > { %s2103_s11 = sld [smem:[#allocation7 + $0x6f]] }
  0x53   : > { %463 = vrot.lane.b32.xlu1 %v2033_v1, %s1881_s23  ;;  %424 = vrot.lane.b32.xlu0 %v2033_v1, %s1882_s18  ;;  %s2105_s9 = sld [smem:[#allocation7 + $0x8a]] }
  0x54   : > { %500 = vrot.lane.b32.xlu2 %v2033_v1, %s3032_s10  ;;  %s2114_s8 = sld [smem:[#allocation7 + $0x2]]  ;;  %v505_v12 = vstv %s2095_s28 }
  0x55   : > { %s2118_s17 = sld [smem:[#allocation7 + $0x1d]]  ;;  %v510_v13 = vstv %s2097_s29 }
  0x56   : > { %s2139_s0 = sld [smem:[#allocation7 + $0x1b]]  ;;  %v515_v14 = vstv %s2099_s30 }
  0x57   : > { %s2143_s1 = sld [smem:[#allocation7 + $0x1c]]  ;;  %v520_v15 = vstv %s2101_s4 }
  0x58   : > { %s2145_s2 = sld [smem:[#allocation7 + $0x36]]  ;;  %v525_v16 = vstv %s2103_s11 }
  0x59   : > { %s2147_s5 = sld [smem:[#allocation7 + $0x37]]  ;;  %v530_v18 = vstv %s2105_s9 }
  0x5a   : > { %s2149_s14 = sld [smem:[#allocation7 + $0x51]]  ;;  %v468_v19 = vstv %s2114_s8 }
  0x5b   : > { %537 = vrot.lane.b32.xlu1 %v2033_v1, %s3028_s21  ;;  %535 = vrot.lane.b32.xlu0 %v2024_v0, %s3028_s21  ;;  %s2153_s13 = sld [smem:[#allocation7 + $0x52]]  ;;  %v473_v21 = vstv %s2118_s17 }
  0x5c   : > { %572 = vrot.lane.b32.xlu2 %v2024_v0, %s3026_s22  ;;  %s2157_s27 = sld [smem:[#allocation7 + $0x6d]]  ;;  %v397_v20 = vstv %s2139_s0 }
  0x5d   : > { %s2163_s15 = sld [smem:[#allocation7 + $0x87]]  ;;  %v398_v31 = vmul.f32 %v397_v20, %v2024_v0  ;;  %v399_v32 = vmul.f32 %v397_v20, %v2033_v1 }
  0x5e   : > { %s2168_s12 = sld [smem:[#allocation7 + $0x88]]  ;;  %v402_v23 = vstv %s2145_s2 }
  0x5f   : > { %s2170_s6 = sld [smem:[#allocation8]]  ;;  %v403_v34 = vmul.f32 %v402_v23, %v2024_v0  ;;  %v404_v35 = vmul.f32 %v402_v23, %v2033_v1  ;;  %v441_v20 = vstv %s2147_s5 }
  0x60   : > { %s2172_s3 = sld [smem:[#allocation8 + $0x1]]  ;;  %v407_v24 = vstv %s2149_s14  ;;  %s3078_s14 = smov 96  }
  0x61   : > { %3072 = sst [smem:[#allocation25_spill]] %s2153_s13  ;;  %v408_v36 = vmul.f32 %v407_v24, %v2024_v0  ;;  %v409_v38 = vmul.f32 %v407_v24, %v2033_v1 }
  0x62   : > { %3073 = sst [smem:[#allocation26_spill]] %s2157_s27 }
  0x63   : > { %609 = vrot.lane.b32.xlu1 %v2024_v0, %s3024_s24  ;;  %574 = vrot.lane.b32.xlu0 %v2033_v1, %s3026_s22  ;;  %s2184_s16 = sld [smem:[#allocation8 + $0x3]]  ;;  %v417_v52 = vstv %s2163_s15 }
  0x64   : > { %611 = vrot.lane.b32.xlu2 %v2033_v1, %s3024_s24  ;;  %3076 = sst [smem:[#allocation27_spill]] %s2168_s12  ;;  %s3077_s12 = smov 110  }
  0x65   : > { %s2186_s7 = sld [smem:[#allocation8 + $0x4]]  ;;  %v384_v26 = vstv %s2170_s6  ;;  %s3079_s6 = smov 95  }
  0x66   : > { %s2192_s20 = sld [smem:[#allocation8 + $0x5]]  ;;  %v385_v29 = vstv %s2172_s3 }
  0x67   : > { %s2200_s27 = sld [smem:[#allocation7 + $0x4]]  ;;  %v2255_v47 = vadd.f32 %v398_v31, %v385_v29  ;;  %v2257_v48 = vadd.f32 %v399_v32, %v385_v29 }
  0x68   : > { %s2207_s13 = sld [smem:[#allocation7 + $0x1f]] }
  0x69   : > { %s2225_s0 = sld [smem:[#allocation7 + $0x70]]  ;;  %v387_v37 = vstv %s2184_s16 }
  0x6a   : > { %s2231_s2 = sld [smem:[#allocation7 + $0x8b]]  ;;  %v2265_v51 = vadd.f32 %v408_v36, %v387_v37  ;;  %v2277_v56 = vadd.f32 %v409_v38, %v387_v37 }
  0x6b   : > { %648 = vrot.lane.b32.xlu1 %v2033_v1, %s3022_s25  ;;  %646 = vrot.lane.b32.xlu0 %v2024_v0, %s3022_s25  ;;  %s2237_s3 = sld [smem:[#allocation7 + $0x5]]  ;;  %v388_v43 = vstv %s2186_s7 }
  0x6c   : > { %683 = vrot.lane.b32.xlu2 %v2024_v0, %s3030_s26  ;;  %v389_v45 = vstv %s2192_s20  ;;  %s2259_s16 = sld [smem:[#allocation7 + $0x3b]] }
  0x6d   : > { %s2270_s7 = sld [smem:[#allocation7 + $0x56]] }
  0x6e   : > { %s2283_s15 = sld [smem:[#allocation7 + $0x71]] }
  0x6f   : > { %s3080_s20 = sld [smem:[#allocation25_spill]] }
  0x70   : > { %s2410_s5 = sld [smem:[#allocation7 + $0x6]] }
  0x71   : > { %s2499_s28 = sld [smem:[#allocation7 + $0x22]] }
  0x72   : > { %s2505_s29 = sld [smem:[#allocation7 + $0x3d]] }
  0x73   : > { %752 = vrot.lane.b32.xlu1 %v2060_v2, %s1882_s18  ;;  %685 = vrot.lane.b32.xlu0 %v2033_v1, %s3030_s26  ;;  %s2509_s30 = sld [smem:[#allocation7 + $0x58]] }
  0x74   : > { %754 = vrot.lane.b32.xlu2 %v2067_v3, %s1882_s18  ;;  %s2512_s4 = sld [smem:[#allocation7 + $0x73]] }
  0x75   : > { %v446_v23 = vstv %s3080_s20  ;;  %s2521_s11 = sld [smem:[#allocation7 + $0x8e]] }
  0x76   : > { %s2531_s9 = sld [smem:[#allocation7 + $0x8]] }
  0x77   : > { %s2539_s8 = sld [smem:[#allocation7 + $0x23]] }
  0x78   : > { %s2541_s17 = sld [smem:[#allocation7 + $0x3e]] }
  0x79   : > { %s2583_s20 = sld [smem:[#allocation7 + $0x40]] }
  0x7b   : > { %790 = vrot.lane.b32.xlu1 %v2067_v3, %s1881_s23  ;;  %788 = vrot.lane.b32.xlu0 %v2060_v2, %s1881_s23 }
  0x7c   : > { %824 = vrot.lane.b32.xlu2 %v2060_v2, %s3032_s10 }
  0x83   : > { %860 = vrot.lane.b32.xlu1 %v2060_v2, %s3028_s21  ;;  %826 = vrot.lane.b32.xlu0 %v2067_v3, %s3032_s10  ;;  %s2133_s10 = sld [smem:[#allocation7 + $0x1]] }
  0x84   : > { %862 = vrot.lane.b32.xlu2 %v2067_v3, %s3028_s21  ;;  %s2129_s21 = sld [smem:[#allocation7 + $0x89]] }
  0x8a   : > { %v493_v42 = vstv %s2129_s21  ;;  %s2413_s21 = sld [smem:[#allocation7 + $0x21]] }
  0x8b   : > { %898 = vrot.lane.b32.xlu1 %v2067_v3, %s3026_s22  ;;  %896 = vrot.lane.b32.xlu0 %v2060_v2, %s3026_s22  ;;  %s2124_s22 = sld [smem:[#allocation7 + $0x6e]] }
  0x8c   : > { %932 = vrot.lane.b32.xlu2 %v2060_v2, %s3024_s24 }
  0x91   : > { %v488_v41 = vstv %s2124_s22  ;;  %s2415_s22 = sld [smem:[#allocation7 + $0x3c]] }
  0x93   : > { %968 = vrot.lane.b32.xlu1 %v2060_v2, %s3022_s25  ;;  %934 = vrot.lane.b32.xlu0 %v2067_v3, %s3024_s24  ;;  %s2122_s24 = sld [smem:[#allocation7 + $0x53]] }
  0x94   : > { %970 = vrot.lane.b32.xlu2 %v2067_v3, %s3022_s25  ;;  %s2120_s25 = sld [smem:[#allocation7 + $0x38]] }
  0x99   : > { %v483_v25 = vstv %s2122_s24  ;;  %s2420_s24 = sld [smem:[#allocation7 + $0x57]] }
  0x9a   : > { %v478_v22 = vstv %s2120_s25  ;;  %s2422_s25 = sld [smem:[#allocation7 + $0x72]] }
  0x9b   : > { %1006 = vrot.lane.b32.xlu1 %v2067_v3, %s3030_s26  ;;  %1004 = vrot.lane.b32.xlu0 %v2060_v2, %s3030_s26  ;;  %s2131_s26 = sld [smem:[#allocation7]] }
  0x9c   : > { %1072 = vrot.lane.b32.xlu2 %v2112_v4, %s1882_s18 }
  0xa1   : > { %v392_v17 = vstv %s2131_s26  ;;  %s2219_s26 = sld [smem:[#allocation7 + $0x55]] }
  0xa2   : > { %v393_v27 = vmul.f32 %v392_v17, %v2024_v0  ;;  %v394_v30 = vmul.f32 %v392_v17, %v2033_v1  ;;  %v431_v17 = vstv %s2133_s10  ;;  %s3083_s10 = smov 94  }
  0xa3   : > { %1108 = vrot.lane.b32.xlu1 %v2112_v4, %s1881_s23  ;;  %1074 = vrot.lane.b32.xlu0 %v2127_v5, %s1882_s18  ;;  %s2155_s18 = sld [smem:[#allocation7 + $0x6c]] }
  0xa4   : > { %1110 = vrot.lane.b32.xlu2 %v2127_v5, %s1881_s23  ;;  %s3074_s23 = smov 112   ;;  %v2242_v44 = vadd.f32 %v393_v27, %v384_v26  ;;  %v2253_v46 = vadd.f32 %v394_v30, %v384_v26  ;;  %v547_v27 = vstv %s2207_s13  ;;  %s2479_s13 = sld [smem:[#allocation7 + $0x8d]] }
  0xa6   : > { %v499_v7 = vpop.permute.xlu2 %498 }
  0xa9   : > { %v412_v28 = vstv %s2155_s18  ;;  %s3081_s18 = sld [smem:[#allocation26_spill]] }
  0xaa   : > { %v413_v39 = vmul.f32 %v412_v28, %v2024_v0  ;;  %v414_v40 = vmul.f32 %v412_v28, %v2033_v1 }
  0xab   : > { %1146 = vrot.lane.b32.xlu1 %v2127_v5, %s3074_s23  ;;  %1144 = vrot.lane.b32.xlu0 %v2112_v4, %s3074_s23  ;;  %s2182_s23 = sld [smem:[#allocation8 + $0x2]] }
  0xac   : > { %1180 = vrot.lane.b32.xlu2 %v2112_v4, %s3075_s19  ;;  %v2279_v57 = vadd.f32 %v413_v39, %v388_v43  ;;  %v2281_v58 = vadd.f32 %v414_v40, %v388_v43 }
  0xae   : > { %v501_v9 = vpop.permute.xlu2 %500 }
  0xaf   : > { %v2176_v10 = vsel %vm502_vm0, %v499_v7, %v501_v9  ;;  %v2180_v11 = vsel %vm502_vm0, %v501_v9, %v499_v7  ;;  %v418_v9 = vmul.f32 %v417_v52, %v2024_v0  ;;  %v436_v0 = vstv %s2143_s1  ;;  %s2404_s1 = sld [smem:[#allocation7 + $0x8c]] }
  0xb0   : > { %v2275_v55 = vmul.f32 %v505_v12, %v2176_v10  ;;  %v2288_v59 = vmul.f32 %v505_v12, %v2180_v11  ;;  %v2293_v60 = vmul.f32 %v510_v13, %v2176_v10  ;;  %v2298_v61 = vmul.f32 %v510_v13, %v2180_v11 }
  0xb1   : > { %v386_v33 = vstv %s2182_s23  ;;  %s3082_s23 = sld [smem:[#allocation27_spill]]  ;;  %v2303_v62 = vmul.f32 %v515_v14, %v2176_v10  ;;  %v2308_v63 = vmul.f32 %v515_v14, %v2180_v11  ;;  %v2313_v6 = vmul.f32 %v520_v15, %v2176_v10 }
  0xb2   : > { %v2261_v49 = vadd.f32 %v403_v34, %v386_v33  ;;  %v2263_v50 = vadd.f32 %v404_v35, %v386_v33  ;;  %v2318_v7 = vmul.f32 %v520_v15, %v2180_v11  ;;  %v2324_v12 = vmul.f32 %v525_v16, %v2176_v10 }
  0xb3   : > { %1216 = vrot.lane.b32.xlu1 %v2112_v4, %s3077_s12  ;;  %1182 = vrot.lane.b32.xlu0 %v2127_v5, %s3075_s19  ;;  %s2213_s19 = sld [smem:[#allocation7 + $0x3a]]  ;;  %v2329_v13 = vmul.f32 %v525_v16, %v2180_v11  ;;  %v2334_v14 = vmul.f32 %v530_v18, %v2176_v10  ;;  %v419_v15 = vmul.f32 %v417_v52, %v2033_v1  ;;  %v451_v24 = vstv %s3081_s18 }
  0xb4   : > { %1218 = vrot.lane.b32.xlu2 %v2127_v5, %s3077_s12  ;;  %s2244_s12 = sld [smem:[#allocation7 + $0x20]]  ;;  %v542_v16 = vstv %s2200_s27  ;;  %v2348_v10 = vmul.f32 %v530_v18, %v2180_v11  ;;  %v2354_v1 = vadd.f32 %v418_v9, %v389_v45 }
  0xb5   : > { %v421_v34 = vadd.f32 %v419_v15, %v389_v45  ;;  %s2495_s27 = sld [smem:[#allocation7 + $0x7]] }
  0xb6   : > { %s2587_s18 = sld [smem:[#allocation7 + $0x5b]] }
  0xb7   : > { %v456_v26 = vstv %s3082_s23  ;;  %s2590_s23 = sld [smem:[#allocation7 + $0x76]] }
  0xb9   : > { %v552_v28 = vstv %s2213_s19  ;;  %s2545_s19 = sld [smem:[#allocation7 + $0x59]] }
  0xbb   : > { %1254 = vrot.lane.b32.xlu1 %v2127_v5, %s3078_s14  ;;  %1252 = vrot.lane.b32.xlu0 %v2112_v4, %s3078_s14  ;;  %s2567_s14 = sld [smem:[#allocation7 + $0x5a]] }
  0xbc   : > { %1288 = vrot.lane.b32.xlu2 %v2112_v4, %s3079_s6 }
  0xbd   : > { %v462_v53 = vpop.permute.xlu1 %461  ;;  %v423_v54 = vpop.permute.xlu0 %422 }
  0xc3   : > { %1290 = vrot.lane.b32.xlu0 %v2127_v5, %s3079_s6  ;;  %1324 = vrot.lane.b32.xlu1 %v2112_v4, %s3083_s10  ;;  %s2573_s6 = sld [smem:[#allocation7 + $0x90]] }
  0xc4   : > { %1326 = vrot.lane.b32.xlu2 %v2127_v5, %s3083_s10  ;;  %s2602_s10 = sld [smem:[#allocation7 + $0x91]] }
  0xc5   : > { %v464_v11 = vpop.permute.xlu1 %463  ;;  %v425_v18 = vpop.permute.xlu0 %424 }
  0xc6   : > { %v466_v37 = vsel %vm465_vm1, %v462_v53, %v464_v11  ;;  %v467_v38 = vsel %vm465_vm1, %v464_v11, %v462_v53  ;;  %v429_v39 = vsel %vm428_vm2, %v423_v54, %v425_v18  ;;  %v430_v40 = vsel %vm428_vm2, %v425_v18, %v423_v54 }
  0xc7   : > { %v469_v43 = vmul.f32 %v468_v19, %v466_v37  ;;  %v470_v45 = vmul.f32 %v468_v19, %v467_v38  ;;  %v474_v52 = vmul.f32 %v473_v21, %v466_v37  ;;  %v475_v5 = vmul.f32 %v473_v21, %v467_v38 }
  0xc8   : > { %v479_v9 = vmul.f32 %v478_v22, %v466_v37  ;;  %v480_v15 = vmul.f32 %v478_v22, %v467_v38  ;;  %v484_v53 = vmul.f32 %v483_v25, %v466_v37  ;;  %v485_v11 = vmul.f32 %v483_v25, %v467_v38 }
  0xc9   : > { %v489_v36 = vmul.f32 %v488_v41, %v466_v37  ;;  %v490_v54 = vmul.f32 %v488_v41, %v467_v38  ;;  %v494_v18 = vmul.f32 %v493_v42, %v466_v37  ;;  %v495_v19 = vmul.f32 %v493_v42, %v467_v38 }
  0xca   : > { %v432_v35 = vmul.f32 %v431_v17, %v429_v39  ;;  %v433_v4 = vmul.f32 %v431_v17, %v430_v40  ;;  %v437_v33 = vmul.f32 %v436_v0, %v429_v39  ;;  %v438_v21 = vmul.f32 %v436_v0, %v430_v40 }
  0xcb   : > { %v442_v32 = vmul.f32 %v441_v20, %v429_v39  ;;  %v443_v31 = vmul.f32 %v441_v20, %v430_v40  ;;  %v447_v30 = vmul.f32 %v446_v23, %v429_v39  ;;  %v448_v22 = vmul.f32 %v446_v23, %v430_v40 }
  0xcc   : > { %v434_v25 = vadd.f32 %v432_v35, %v2242_v44  ;;  %v435_v29 = vadd.f32 %v433_v4, %v2253_v46  ;;  %v439_v41 = vadd.f32 %v437_v33, %v2255_v47  ;;  %v440_v37 = vadd.f32 %v438_v21, %v2257_v48 }
  0xcd   : > { %v444_v42 = vadd.f32 %v442_v32, %v2261_v49  ;;  %v445_v17 = vadd.f32 %v443_v31, %v2263_v50  ;;  %v449_v0 = vadd.f32 %v447_v30, %v2265_v51  ;;  %v450_v20 = vadd.f32 %v448_v22, %v2277_v56  ;;  %v536_v23 = vpop.permute.xlu0 %535 }
  0xce   : > { %v452_v44 = vmul.f32 %v451_v24, %v429_v39  ;;  %v453_v35 = vmul.f32 %v451_v24, %v430_v40  ;;  %v457_v46 = vmul.f32 %v456_v26, %v429_v39  ;;  %v458_v4 = vmul.f32 %v456_v26, %v430_v40 }
  0xcf   : > { %v471_v47 = vadd.f32 %v469_v43, %v434_v25  ;;  %v472_v48 = vadd.f32 %v470_v45, %v435_v29  ;;  %v476_v49 = vadd.f32 %v474_v52, %v439_v41  ;;  %v477_v32 = vadd.f32 %v475_v5, %v440_v37  ;;  %v538_v43 = vpop.permute.xlu1 %537 }
  0xd0   : > { %v454_v50 = vadd.f32 %v452_v44, %v2279_v57  ;;  %v455_v51 = vadd.f32 %v453_v35, %v2281_v58  ;;  %v459_v56 = vadd.f32 %v457_v46, %v2354_v1  ;;  %v460_v30 = vadd.f32 %v458_v4, %v421_v34 }
  0xd1   : > { %v481_v24 = vadd.f32 %v479_v9, %v444_v42  ;;  %v482_v26 = vadd.f32 %v480_v15, %v445_v17  ;;  %v486_v31 = vadd.f32 %v484_v53, %v449_v0  ;;  %v487_v33 = vadd.f32 %v485_v11, %v450_v20 }
  0xd2   : > { %v491_v38 = vadd.f32 %v489_v36, %v454_v50  ;;  %v492_v39 = vadd.f32 %v490_v54, %v455_v51  ;;  %v496_v29 = vadd.f32 %v494_v18, %v459_v56  ;;  %v497_v40 = vadd.f32 %v495_v19, %v460_v30 }
  0xd3   : > { %v508_v57 = vadd.f32 %v2275_v55, %v471_v47  ;;  %v509_v58 = vadd.f32 %v2288_v59, %v472_v48  ;;  %v513_v1 = vadd.f32 %v2293_v60, %v476_v49  ;;  %v514_v34 = vadd.f32 %v2298_v61, %v477_v32 }
  0xd4   : > { %v518_v36 = vadd.f32 %v2303_v62, %v481_v24  ;;  %v519_v45 = vadd.f32 %v2308_v63, %v482_v26  ;;  %v523_v52 = vadd.f32 %v2313_v6, %v486_v31  ;;  %v524_v55 = vadd.f32 %v2318_v7, %v487_v33  ;;  %v573_v7 = vpop.permute.xlu2 %572 }
  0xd5   : > { %v528_v59 = vadd.f32 %v2324_v12, %v491_v38  ;;  %v529_v60 = vadd.f32 %v2329_v13, %v492_v39  ;;  %v533_v61 = vadd.f32 %v2334_v14, %v496_v29  ;;  %v534_v62 = vadd.f32 %v2348_v10, %v497_v40  ;;  %v575_v12 = vpop.permute.xlu0 %574 }
  0xd6   : > { %v540_v63 = vsel %vm539_vm3, %v536_v23, %v538_v43  ;;  %v541_v6 = vsel %vm539_vm3, %v538_v43, %v536_v23  ;;  %v604_v5 = vstv %s2404_s1  ;;  %v616_v9 = vstv %s2410_s5  ;;  %s2611_s1 = sld [smem:[#allocation7 + $0xb]] }
  0xd7   : > { %v543_v13 = vmul.f32 %v542_v16, %v540_v63  ;;  %v544_v14 = vmul.f32 %v542_v16, %v541_v6  ;;  %v548_v10 = vmul.f32 %v547_v27, %v540_v63  ;;  %v549_v15 = vmul.f32 %v547_v27, %v541_v6  ;;  %v610_v32 = vpop.permute.xlu1 %609  ;;  %s2613_s5 = sld [smem:[#allocation7 + $0x26]] }
  0xd8   : > { %v553_v53 = vmul.f32 %v552_v28, %v540_v63  ;;  %v621_v11 = vstv %s2413_s21  ;;  %v626_v54 = vstv %s2415_s22  ;;  %v631_v18 = vstv %s2420_s24  ;;  %s2617_s21 = sld [smem:[#allocation7 + $0x41]] }
  0xd9   : > { %v554_v19 = vmul.f32 %v552_v28, %v541_v6  ;;  %v3084_v21 = vstv %s2219_s26  ;;  %v577_v27 = vsel %vm576_vm4, %v573_v7, %v575_v12  ;;  %v545_v41 = vadd.f32 %v543_v13, %v508_v57  ;;  %s2548_s26 = sld [smem:[#allocation7 + $0x74]] }
  0xda   : > { %v558_v16 = vmul.f32 %v3084_v21, %v540_v63  ;;  %v3085_v22 = vmov %v3084_v21  ;;  %v546_v37 = vadd.f32 %v544_v14, %v509_v58  ;;  %v578_v42 = vsel %vm576_vm4, %v575_v12, %v573_v7  ;;  %s2620_s22 = sld [smem:[#allocation7 + $0x5c]] }
  0xdb   : > { %v559_v25 = vmul.f32 %v3085_v22, %v541_v6  ;;  %v636_v17 = vstv %s2422_s25  ;;  %v550_v0 = vadd.f32 %v548_v10, %v513_v1  ;;  %v551_v20 = vadd.f32 %v549_v15, %v514_v34  ;;  %s2623_s24 = sld [smem:[#allocation7 + $0x77]] }
  0xdc   : > { %v3086_v23 = vstv %s2225_s0  ;;  %v555_v46 = vadd.f32 %v553_v53, %v518_v36  ;;  %v3088_v4 = vstv %s2231_s2  ;;  %v3090_v50 = vstv %s2237_s3  ;;  %v612_v14 = vpop.permute.xlu2 %611  ;;  %s2551_s0 = sld [smem:[#allocation7 + $0x8f]] }
  0xdd   : > { %v563_v28 = vmul.f32 %v3086_v23, %v540_v63  ;;  %v3087_v44 = vmov %v3086_v23  ;;  %v568_v47 = vmul.f32 %v3088_v4, %v540_v63  ;;  %v3089_v48 = vmov %v3088_v4  ;;  %v647_v4 = vpop.permute.xlu0 %646  ;;  %s2553_s2 = sld [smem:[#allocation7 + $0x9]] }
  0xde   : > { %v564_v35 = vmul.f32 %v3087_v44, %v541_v6  ;;  %v569_v49 = vmul.f32 %v3089_v48, %v541_v6  ;;  %v580_v51 = vmul.f32 %v3090_v50, %v577_v27  ;;  %v556_v56 = vadd.f32 %v554_v19, %v519_v45  ;;  %s2555_s3 = sld [smem:[#allocation7 + $0x24]] }
  0xdf   : > { %v560_v30 = vadd.f32 %v558_v16, %v523_v52  ;;  %v561_v24 = vadd.f32 %v559_v25, %v524_v55  ;;  %v3091_v26 = vmov %v3090_v50  ;;  %v565_v33 = vadd.f32 %v563_v28, %v528_v59  ;;  %s2625_s25 = sld [smem:[#allocation7 + $0x92]] }
  0xe0   : > { %v581_v31 = vmul.f32 %v3091_v26, %v578_v42  ;;  %v566_v38 = vadd.f32 %v564_v35, %v529_v60  ;;  %v3092_v39 = vstv %s2244_s12  ;;  %v3094_v57 = vstv %s2259_s16  ;;  %s2561_s12 = sld [smem:[#allocation7 + $0x3f]] }
  0xe1   : > { %v585_v29 = vmul.f32 %v3092_v39, %v577_v27  ;;  %v3093_v40 = vmov %v3092_v39  ;;  %v590_v58 = vmul.f32 %v3094_v57, %v577_v27  ;;  %v3095_v1 = vmov %v3094_v57  ;;  %s2570_s16 = sld [smem:[#allocation7 + $0x75]] }
  0xe2   : > { %v586_v43 = vmul.f32 %v3093_v40, %v578_v42  ;;  %v591_v34 = vmul.f32 %v3095_v1, %v578_v42  ;;  %v3096_v36 = vstv %s2270_s7  ;;  %v570_v55 = vadd.f32 %v568_v47, %v533_v61  ;;  %s2577_s7 = sld [smem:[#allocation7 + $0xa]] }
  0xe3   : > { %v595_v45 = vmul.f32 %v3096_v36, %v577_v27  ;;  %v3097_v63 = vmov %v3096_v36  ;;  %v571_v6 = vadd.f32 %v569_v49, %v534_v62  ;;  %v582_v7 = vadd.f32 %v580_v51, %v545_v41 }
  0xe4   : > { %v596_v52 = vmul.f32 %v3097_v63, %v578_v42  ;;  %v3098_v12 = vstv %s2283_s15  ;;  %v583_v59 = vadd.f32 %v581_v31, %v546_v37  ;;  %v605_v15 = vmul.f32 %v604_v5, %v577_v27  ;;  %s2579_s15 = sld [smem:[#allocation7 + $0x25]] }
  0xe5   : > { %v600_v13 = vmul.f32 %v3098_v12, %v577_v27  ;;  %v3099_v60 = vmov %v3098_v12  ;;  %v606_v53 = vmul.f32 %v604_v5, %v578_v42  ;;  %v587_v19 = vadd.f32 %v585_v29, %v550_v0 }
  0xe6   : > { %v601_v10 = vmul.f32 %v3099_v60, %v578_v42  ;;  %v588_v21 = vadd.f32 %v586_v43, %v551_v20  ;;  %v592_v16 = vadd.f32 %v590_v58, %v555_v46  ;;  %v593_v61 = vadd.f32 %v591_v34, %v556_v56  ;;  %v649_v46 = vpop.permute.xlu1 %648 }
  0xe7   : > { %v597_v62 = vadd.f32 %v595_v45, %v560_v30  ;;  %v598_v22 = vadd.f32 %v596_v52, %v561_v24  ;;  %v614_v25 = vsel %vm613_vm5, %v610_v32, %v612_v14  ;;  %v615_v41 = vsel %vm613_vm5, %v612_v14, %v610_v32 }
  0xe8   : > { %v602_v5 = vadd.f32 %v600_v13, %v565_v33  ;;  %v617_v27 = vmul.f32 %v616_v9, %v614_v25  ;;  %v618_v37 = vmul.f32 %v616_v9, %v615_v41  ;;  %v622_v42 = vmul.f32 %v621_v11, %v614_v25 }
  0xe9   : > { %v603_v0 = vadd.f32 %v601_v10, %v566_v38  ;;  %v607_v20 = vadd.f32 %v605_v15, %v570_v55  ;;  %v608_v23 = vadd.f32 %v606_v53, %v571_v6  ;;  %v641_v28 = vstv %s2479_s13  ;;  %s2633_s13 = sld [smem:[#allocation7 + $0xc]] }
  0xea   : > { %v623_v44 = vmul.f32 %v621_v11, %v615_v41  ;;  %v627_v35 = vmul.f32 %v626_v54, %v614_v25  ;;  %v628_v9 = vmul.f32 %v626_v54, %v615_v41  ;;  %v619_v47 = vadd.f32 %v617_v27, %v582_v7 }
  0xeb   : > { %v620_v48 = vadd.f32 %v618_v37, %v583_v59  ;;  %v632_v49 = vmul.f32 %v631_v18, %v614_v25  ;;  %v633_v32 = vmul.f32 %v631_v18, %v615_v41  ;;  %v624_v50 = vadd.f32 %v622_v42, %v587_v19  ;;  %v686_v19 = vpop.permute.xlu0 %685 }
  0xec   : > { %v637_v11 = vmul.f32 %v636_v17, %v614_v25  ;;  %v638_v51 = vmul.f32 %v636_v17, %v615_v41  ;;  %v642_v54 = vmul.f32 %v641_v28, %v614_v25  ;;  %v651_v56 = vsel %vm650_vm6, %v647_v4, %v649_v46 }
  0xed   : > { %v652_v30 = vsel %vm650_vm6, %v649_v46, %v647_v4  ;;  %v653_v24 = vstv %s2495_s27  ;;  %v658_v26 = vstv %s2499_s28  ;;  %v625_v18 = vadd.f32 %v623_v44, %v588_v21  ;;  %s2636_s27 = sld [smem:[#allocation7 + $0x27]] }
  0xee   : > { %v629_v31 = vadd.f32 %v627_v35, %v592_v16  ;;  %v630_v33 = vadd.f32 %v628_v9, %v593_v61  ;;  %v643_v17 = vmul.f32 %v641_v28, %v615_v41  ;;  %v634_v38 = vadd.f32 %v632_v49, %v597_v62  ;;  %s2639_s28 = sld [smem:[#allocation7 + $0x42]] }
  0xef   : > { %v635_v39 = vadd.f32 %v633_v32, %v598_v22  ;;  %v654_v29 = vmul.f32 %v653_v24, %v651_v56  ;;  %v655_v40 = vmul.f32 %v653_v24, %v652_v30  ;;  %v659_v43 = vmul.f32 %v658_v26, %v651_v56  ;;  %v684_v22 = vpop.permute.xlu2 %683 }
  0xf0   : > { %v660_v57 = vmul.f32 %v658_v26, %v652_v30  ;;  %v663_v58 = vstv %s2505_s29  ;;  %v668_v1 = vstv %s2509_s30  ;;  %v639_v34 = vadd.f32 %v637_v11, %v602_v5  ;;  %s2641_s29 = sld [smem:[#allocation7 + $0x5d]] }
  0xf1   : > { %v640_v36 = vadd.f32 %v638_v51, %v603_v0  ;;  %v644_v45 = vadd.f32 %v642_v54, %v607_v20  ;;  %v673_v63 = vstv %s2512_s4  ;;  %v645_v52 = vadd.f32 %v643_v17, %v608_v23  ;;  %s2645_s30 = sld [smem:[#allocation7 + $0x78]] }
  0xf2   : > { %v664_v55 = vmul.f32 %v663_v58, %v651_v56  ;;  %v665_v6 = vmul.f32 %v663_v58, %v652_v30  ;;  %v678_v7 = vstv %s2521_s11  ;;  %v656_v12 = vadd.f32 %v654_v29, %v619_v47  ;;  %s2650_s4 = sld [smem:[#allocation7 + $0x93]] }
  0xf3   : > { %v657_v13 = vadd.f32 %v655_v40, %v620_v48  ;;  %v669_v14 = vmul.f32 %v668_v1, %v651_v56  ;;  %v670_v59 = vmul.f32 %v668_v1, %v652_v30  ;;  %v661_v60 = vadd.f32 %v659_v43, %v624_v50  ;;  %v753_v43 = vpop.permute.xlu1 %752  ;;  %s2655_s11 = sld [smem:[#allocation7 + $0xd]] }
  0xf4   : > { %v662_v10 = vadd.f32 %v660_v57, %v625_v18  ;;  %v674_v15 = vmul.f32 %v673_v63, %v651_v56  ;;  %v675_v53 = vmul.f32 %v673_v63, %v652_v30  ;;  %v666_v21 = vadd.f32 %v664_v55, %v629_v31 }
  0xf5   : > { %v667_v16 = vadd.f32 %v665_v6, %v630_v33  ;;  %v679_v61 = vmul.f32 %v678_v7, %v651_v56  ;;  %v680_v62 = vmul.f32 %v678_v7, %v652_v30  ;;  %v690_v25 = vstv %s2531_s9  ;;  %s2657_s9 = sld [smem:[#allocation7 + $0x28]] }
  0xf6   : > { %v695_v41 = vstv %s2539_s8  ;;  %v700_v5 = vstv %s2541_s17  ;;  %v671_v27 = vadd.f32 %v669_v14, %v634_v38  ;;  %v672_v37 = vadd.f32 %v670_v59, %v635_v39  ;;  %s2661_s8 = sld [smem:[#allocation7 + $0x43]] }
  0xf7   : > { %v688_v42 = vsel %vm687_vm7, %v684_v22, %v686_v19  ;;  %v689_v0 = vsel %vm687_vm7, %v686_v19, %v684_v22  ;;  %v676_v20 = vadd.f32 %v674_v15, %v639_v34  ;;  %v705_v44 = vstv %s2545_s19  ;;  %v755_v55 = vpop.permute.xlu2 %754  ;;  %s2664_s17 = sld [smem:[#allocation7 + $0x5e]] }
  0xf8   : > { %v691_v23 = vmul.f32 %v690_v25, %v688_v42  ;;  %v692_v28 = vmul.f32 %v690_v25, %v689_v0  ;;  %v696_v35 = vmul.f32 %v695_v41, %v688_v42  ;;  %v697_v9 = vmul.f32 %v695_v41, %v689_v0  ;;  %s2667_s19 = sld [smem:[#allocation7 + $0x79]] }
  0xf9   : > { %v701_v46 = vmul.f32 %v700_v5, %v688_v42  ;;  %v710_v4 = vstv %s2548_s26  ;;  %v677_v47 = vadd.f32 %v675_v53, %v640_v36  ;;  %v681_v48 = vadd.f32 %v679_v61, %v644_v45  ;;  %s2669_s26 = sld [smem:[#allocation7 + $0x94]] }
  0xfa   : > { %v682_v49 = vadd.f32 %v680_v62, %v645_v52  ;;  %v702_v32 = vmul.f32 %v700_v5, %v689_v0  ;;  %v693_v50 = vadd.f32 %v691_v23, %v656_v12  ;;  %v694_v11 = vadd.f32 %v692_v28, %v657_v13 }
  0xfb   : > { %v706_v51 = vmul.f32 %v705_v44, %v688_v42  ;;  %v707_v54 = vmul.f32 %v705_v44, %v689_v0  ;;  %v711_v56 = vmul.f32 %v710_v4, %v688_v42  ;;  %v712_v30 = vmul.f32 %v710_v4, %v689_v0 }
  0xfc   : > { %v715_v24 = vstv %s2551_s0  ;;  %v722_v26 = vstv %s2553_s2  ;;  %v698_v18 = vadd.f32 %v696_v35, %v661_v60  ;;  %v699_v31 = vadd.f32 %v697_v9, %v662_v10  ;;  %s2677_s0 = sld [smem:[#allocation7 + $0xe]] }
  0xfd   : > { %v703_v33 = vadd.f32 %v701_v46, %v666_v21  ;;  %v716_v17 = vmul.f32 %v715_v24, %v688_v42  ;;  %v704_v38 = vadd.f32 %v702_v32, %v667_v16  ;;  %v717_v39 = vmul.f32 %v715_v24, %v689_v0  ;;  %s2680_s2 = sld [smem:[#allocation7 + $0x29]] }
  0xfe   : > { %v723_v29 = vmul.f32 %v722_v26, %v2060_v2  ;;  %v727_v40 = vstv %s2555_s3  ;;  %v708_v57 = vadd.f32 %v706_v51, %v671_v27  ;;  %v709_v58 = vadd.f32 %v707_v54, %v672_v37  ;;  %s2683_s3 = sld [smem:[#allocation7 + $0x44]] }
  0xff   : > { %v724_v1 = vmul.f32 %v722_v26, %v2067_v3  ;;  %v732_v34 = vstv %s2561_s12  ;;  %v713_v36 = vadd.f32 %v711_v56, %v676_v20  ;;  %v714_v45 = vadd.f32 %v712_v30, %v677_v47  ;;  %s2685_s12 = sld [smem:[#allocation7 + $0x5f]] }
 0x100   : > { %v718_v63 = vadd.f32 %v716_v17, %v681_v48  ;;  %v728_v52 = vmul.f32 %v727_v40, %v2060_v2  ;;  %v729_v6 = vmul.f32 %v727_v40, %v2067_v3  ;;  %v737_v7 = vstv %s2567_s14  ;;  %s2689_s14 = sld [smem:[#allocation7 + $0x7a]] }
 0x101   : > { %v742_v12 = vstv %s2570_s16  ;;  %v747_v13 = vstv %s2573_s6  ;;  %v719_v14 = vadd.f32 %v717_v39, %v682_v49  ;;  %v725_v59 = vadd.f32 %v723_v29, %v693_v50  ;;  %v791_v50 = vpop.permute.xlu1 %790  ;;  %s2692_s16 = sld [smem:[#allocation7 + $0x95]] }
 0x102   : > { %v733_v60 = vmul.f32 %v732_v34, %v2060_v2  ;;  %v734_v10 = vmul.f32 %v732_v34, %v2067_v3  ;;  %v738_v15 = vmul.f32 %v737_v7, %v2060_v2  ;;  %v739_v53 = vmul.f32 %v737_v7, %v2067_v3  ;;  %s2696_s6 = sld [smem:[#allocation7 + $0xf]] }
 0x103   : > { %v743_v19 = vmul.f32 %v742_v12, %v2060_v2  ;;  %v744_v21 = vmul.f32 %v742_v12, %v2067_v3  ;;  %v726_v16 = vadd.f32 %v724_v1, %v694_v11  ;;  %v730_v61 = vadd.f32 %v728_v52, %v698_v18 }
 0x104   : > { %v748_v62 = vmul.f32 %v747_v13, %v2060_v2  ;;  %v756_v22 = vsel %vm428_vm2, %v753_v43, %v755_v55  ;;  %v731_v25 = vadd.f32 %v729_v6, %v699_v31  ;;  %v749_v41 = vmul.f32 %v747_v13, %v2067_v3  ;;  %v789_v2 = vpop.permute.xlu0 %788 }
 0x105   : > { %v757_v5 = vsel %vm428_vm2, %v755_v55, %v753_v43  ;;  %v758_v27 = vstv %s2577_s7  ;;  %v735_v37 = vadd.f32 %v733_v60, %v703_v33  ;;  %v736_v42 = vadd.f32 %v734_v10, %v704_v38  ;;  %v825_v55 = vpop.permute.xlu2 %824  ;;  %s2701_s7 = sld [smem:[#allocation7 + $0x2a]] }
 0x106   : > { %v740_v0 = vadd.f32 %v738_v15, %v708_v57  ;;  %v741_v20 = vadd.f32 %v739_v53, %v709_v58  ;;  %v745_v23 = vadd.f32 %v743_v19, %v713_v36  ;;  %v746_v28 = vadd.f32 %v744_v21, %v714_v45 }
 0x107   : > { %v763_v44 = vstv %s2579_s15  ;;  %v768_v35 = vstv %s2583_s20  ;;  %v750_v3 = vadd.f32 %v748_v62, %v718_v63  ;;  %v759_v9 = vmul.f32 %v758_v27, %v756_v22  ;;  %s2703_s15 = sld [smem:[#allocation7 + $0x45]] }
 0x108   : > { %v760_v46 = vmul.f32 %v758_v27, %v757_v5  ;;  %v773_v4 = vstv %s2587_s18  ;;  %v751_v47 = vadd.f32 %v749_v41, %v719_v14  ;;  %v764_v48 = vmul.f32 %v763_v44, %v756_v22  ;;  %s2708_s20 = sld [smem:[#allocation7 + $0x60]] }
 0x109   : > { %v765_v49 = vmul.f32 %v763_v44, %v757_v5  ;;  %v778_v32 = vstv %s2590_s23  ;;  %v761_v11 = vadd.f32 %v759_v9, %v725_v59  ;;  %v769_v54 = vmul.f32 %v768_v35, %v756_v22  ;;  %v861_v44 = vpop.permute.xlu1 %860  ;;  %s2711_s18 = sld [smem:[#allocation7 + $0x7b]] }
 0x10a   : > { %v762_v51 = vadd.f32 %v760_v46, %v726_v16  ;;  %v770_v56 = vmul.f32 %v768_v35, %v757_v5  ;;  %v766_v30 = vadd.f32 %v764_v48, %v730_v61  ;;  %v774_v26 = vmul.f32 %v773_v4, %v756_v22  ;;  %s2713_s23 = sld [smem:[#allocation7 + $0x96]] }
 0x10b   : > { %v767_v24 = vadd.f32 %v765_v49, %v731_v25  ;;  %v775_v18 = vmul.f32 %v773_v4, %v757_v5  ;;  %v779_v31 = vmul.f32 %v778_v32, %v756_v22  ;;  %v780_v33 = vmul.f32 %v778_v32, %v757_v5 }
 0x10c   : > { %v783_v17 = vstv %s2602_s10  ;;  %v792_v38 = vsel %vm465_vm1, %v789_v2, %v791_v50  ;;  %v771_v39 = vadd.f32 %v769_v54, %v735_v37  ;;  %v772_v29 = vadd.f32 %v770_v56, %v736_v42  ;;  %v827_v14 = vpop.permute.xlu0 %826  ;;  %s2718_s10 = sld [smem:[#allocation7 + $0x10]] }
 0x10d   : > { %v793_v40 = vsel %vm465_vm1, %v791_v50, %v789_v2  ;;  %v794_v43 = vstv %s2611_s1  ;;  %v776_v57 = vadd.f32 %v774_v26, %v740_v0  ;;  %v799_v34 = vstv %s2613_s5  ;;  %s2723_s1 = sld [smem:[#allocation7 + $0x2b]] }
 0x10e   : > { %v795_v58 = vmul.f32 %v794_v43, %v792_v38  ;;  %v796_v1 = vmul.f32 %v794_v43, %v793_v40  ;;  %v777_v36 = vadd.f32 %v775_v18, %v741_v20  ;;  %v784_v45 = vmul.f32 %v783_v17, %v756_v22  ;;  %s2727_s5 = sld [smem:[#allocation7 + $0x46]] }
 0x10f   : > { %v785_v63 = vmul.f32 %v783_v17, %v757_v5  ;;  %v804_v52 = vstv %s2617_s21  ;;  %v781_v6 = vadd.f32 %v779_v31, %v745_v23  ;;  %v782_v7 = vadd.f32 %v780_v33, %v746_v28  ;;  %s2729_s21 = sld [smem:[#allocation7 + $0x61]] }
 0x110   : > { %v800_v12 = vmul.f32 %v799_v34, %v792_v38  ;;  %v801_v13 = vmul.f32 %v799_v34, %v793_v40  ;;  %v786_v59 = vadd.f32 %v784_v45, %v750_v3  ;;  %v809_v10 = vstv %s2620_s22  ;;  %s2731_s22 = sld [smem:[#allocation7 + $0x7c]] }
 0x111   : > { %v787_v60 = vadd.f32 %v785_v63, %v751_v47  ;;  %v814_v15 = vstv %s2623_s24  ;;  %v797_v53 = vadd.f32 %v795_v58, %v761_v11  ;;  %v798_v19 = vadd.f32 %v796_v1, %v762_v51  ;;  %s2736_s24 = sld [smem:[#allocation7 + $0x97]] }
 0x112   : > { %v805_v21 = vmul.f32 %v804_v52, %v792_v38  ;;  %v806_v16 = vmul.f32 %v804_v52, %v793_v40  ;;  %v810_v61 = vmul.f32 %v809_v10, %v792_v38  ;;  %v811_v62 = vmul.f32 %v809_v10, %v793_v40 }
 0x113   : > { %v819_v22 = vstv %s2625_s25  ;;  %v828_v25 = vsel %vm502_vm0, %v825_v55, %v827_v14  ;;  %v802_v41 = vadd.f32 %v800_v12, %v766_v30  ;;  %v803_v5 = vadd.f32 %v801_v13, %v767_v24  ;;  %v863_v30 = vpop.permute.xlu2 %862  ;;  %s2740_s25 = sld [smem:[#allocation7 + $0x11]] }
 0x114   : > { %v815_v27 = vmul.f32 %v814_v15, %v792_v38  ;;  %v816_v37 = vmul.f32 %v814_v15, %v793_v40  ;;  %v820_v42 = vmul.f32 %v819_v22, %v792_v38  ;;  %v821_v0 = vmul.f32 %v819_v22, %v793_v40 }
 0x115   : > { %v829_v20 = vsel %vm502_vm0, %v827_v14, %v825_v55  ;;  %v830_v2 = vstv %s2633_s13  ;;  %v807_v23 = vadd.f32 %v805_v21, %v771_v39  ;;  %v808_v28 = vadd.f32 %v806_v16, %v772_v29  ;;  %v897_v14 = vpop.permute.xlu0 %896  ;;  %s2745_s13 = sld [smem:[#allocation7 + $0x2c]] }
 0x116   : > { %v831_v35 = vmul.f32 %v830_v2, %v828_v25  ;;  %v832_v3 = vmul.f32 %v830_v2, %v829_v20  ;;  %v812_v9 = vadd.f32 %v810_v61, %v776_v57  ;;  %v813_v46 = vadd.f32 %v811_v62, %v777_v36 }
 0x117   : > { %v835_v4 = vstv %s2636_s27  ;;  %v840_v47 = vstv %s2639_s28  ;;  %v817_v48 = vadd.f32 %v815_v27, %v781_v6  ;;  %v845_v50 = vstv %s2641_s29  ;;  %s2747_s27 = sld [smem:[#allocation7 + $0x47]] }
 0x118   : > { %v836_v49 = vmul.f32 %v835_v4, %v828_v25  ;;  %v837_v32 = vmul.f32 %v835_v4, %v829_v20  ;;  %v818_v11 = vadd.f32 %v816_v37, %v782_v7  ;;  %v822_v51 = vadd.f32 %v820_v42, %v786_v59  ;;  %s2753_s28 = sld [smem:[#allocation7 + $0x62]] }
 0x119   : > { %v823_v54 = vadd.f32 %v821_v0, %v787_v60  ;;  %v850_v56 = vstv %s2645_s30  ;;  %v833_v24 = vadd.f32 %v831_v35, %v797_v53  ;;  %v834_v26 = vadd.f32 %v832_v3, %v798_v19  ;;  %v899_v53 = vpop.permute.xlu1 %898  ;;  %s2755_s29 = sld [smem:[#allocation7 + $0x7d]] }
 0x11a   : > { %v841_v18 = vmul.f32 %v840_v47, %v828_v25  ;;  %v842_v31 = vmul.f32 %v840_v47, %v829_v20  ;;  %v838_v33 = vadd.f32 %v836_v49, %v802_v41  ;;  %v839_v17 = vadd.f32 %v837_v32, %v803_v5  ;;  %s2757_s30 = sld [smem:[#allocation7 + $0x98]] }
 0x11b   : > { %v846_v38 = vmul.f32 %v845_v50, %v828_v25  ;;  %v847_v39 = vmul.f32 %v845_v50, %v829_v20  ;;  %v851_v29 = vmul.f32 %v850_v56, %v828_v25  ;;  %v852_v40 = vmul.f32 %v850_v56, %v829_v20 }
 0x11c   : > { %v855_v43 = vstv %s2650_s4  ;;  %v864_v57 = vsel %vm539_vm3, %v861_v44, %v863_v30  ;;  %v865_v34 = vsel %vm539_vm3, %v863_v30, %v861_v44  ;;  %v866_v36 = vstv %s2655_s11  ;;  %s2759_s4 = sld [smem:[#allocation7 + $0x12]] }
 0x11d   : > { %v856_v58 = vmul.f32 %v855_v43, %v828_v25  ;;  %v857_v1 = vmul.f32 %v855_v43, %v829_v20  ;;  %v843_v45 = vadd.f32 %v841_v18, %v807_v23  ;;  %v867_v63 = vmul.f32 %v866_v36, %v864_v57  ;;  %s2767_s11 = sld [smem:[#allocation7 + $0x2d]] }
 0x11e   : > { %v868_v52 = vmul.f32 %v866_v36, %v865_v34  ;;  %v871_v55 = vstv %s2657_s9  ;;  %v844_v6 = vadd.f32 %v842_v31, %v808_v28  ;;  %v848_v7 = vadd.f32 %v846_v38, %v812_v9  ;;  %s2771_s9 = sld [smem:[#allocation7 + $0x48]] }
 0x11f   : > { %v849_v12 = vadd.f32 %v847_v39, %v813_v46  ;;  %v876_v13 = vstv %s2661_s8  ;;  %v853_v59 = vadd.f32 %v851_v29, %v817_v48  ;;  %v854_v60 = vadd.f32 %v852_v40, %v818_v11  ;;  %v933_v48 = vpop.permute.xlu2 %932  ;;  %s2773_s8 = sld [smem:[#allocation7 + $0x63]] }
 0x120   : > { %v872_v10 = vmul.f32 %v871_v55, %v864_v57  ;;  %v873_v15 = vmul.f32 %v871_v55, %v865_v34  ;;  %v858_v19 = vadd.f32 %v856_v58, %v822_v51  ;;  %v859_v21 = vadd.f32 %v857_v1, %v823_v54 }
 0x121   : > { %v881_v16 = vstv %s2664_s17  ;;  %v886_v61 = vstv %s2667_s19  ;;  %v869_v62 = vadd.f32 %v867_v63, %v833_v24  ;;  %v870_v22 = vadd.f32 %v868_v52, %v834_v26  ;;  %s2775_s17 = sld [smem:[#allocation7 + $0x7e]] }
 0x122   : > { %v877_v25 = vmul.f32 %v876_v13, %v864_v57  ;;  %v878_v41 = vmul.f32 %v876_v13, %v865_v34  ;;  %v882_v5 = vmul.f32 %v881_v16, %v864_v57  ;;  %v883_v27 = vmul.f32 %v881_v16, %v865_v34  ;;  %s3100_s19 = sld [smem:[#allocation24_spill]] }
 0x123   : > { %v891_v37 = vstv %s2669_s26  ;;  %v900_v42 = vsel %vm576_vm4, %v897_v14, %v899_v53  ;;  %v874_v0 = vadd.f32 %v872_v10, %v838_v33  ;;  %v875_v20 = vadd.f32 %v873_v15, %v839_v17  ;;  %v935_v33 = vpop.permute.xlu0 %934  ;;  %s2780_s26 = sld [smem:[#allocation7 + $0x99]] }
 0x124   : > { %v887_v2 = vmul.f32 %v886_v61, %v864_v57  ;;  %v888_v23 = vmul.f32 %v886_v61, %v865_v34  ;;  %v892_v28 = vmul.f32 %v891_v37, %v864_v57  ;;  %v893_v44 = vmul.f32 %v891_v37, %v865_v34 }
 0x125   : > { %v901_v35 = vsel %vm576_vm4, %v899_v53, %v897_v14  ;;  %v902_v3 = vstv %s2677_s0  ;;  %v879_v9 = vadd.f32 %v877_v25, %v843_v45  ;;  %v880_v46 = vadd.f32 %v878_v41, %v844_v6  ;;  %v969_v53 = vpop.permute.xlu1 %968  ;;  %s2783_s0 = sld [smem:[#allocation7 + $0x13]] }
 0x126   : > { %v903_v4 = vmul.f32 %v902_v3, %v900_v42  ;;  %v904_v47 = vmul.f32 %v902_v3, %v901_v35  ;;  %v884_v49 = vadd.f32 %v882_v5, %v848_v7  ;;  %v885_v32 = vadd.f32 %v883_v27, %v849_v12 }
 0x127   : > { %v907_v50 = vstv %s2680_s2  ;;  %v912_v11 = vstv %s2683_s3  ;;  %v889_v51 = vadd.f32 %v887_v2, %v853_v59  ;;  %v917_v30 = vstv %s2685_s12  ;;  %s2785_s2 = sld [smem:[#allocation7 + $0x2e]] }
 0x128   : > { %v908_v54 = vmul.f32 %v907_v50, %v900_v42  ;;  %v909_v56 = vmul.f32 %v907_v50, %v901_v35  ;;  %v890_v24 = vadd.f32 %v888_v23, %v854_v60  ;;  %v894_v26 = vadd.f32 %v892_v28, %v858_v19  ;;  %s2788_s3 = sld [smem:[#allocation7 + $0x49]] }
 0x129   : > { %v895_v18 = vadd.f32 %v893_v44, %v859_v21  ;;  %v922_v31 = vstv %s2689_s14  ;;  %v905_v17 = vadd.f32 %v903_v4, %v869_v62  ;;  %v906_v38 = vadd.f32 %v904_v47, %v870_v22  ;;  %v971_v62 = vpop.permute.xlu2 %970  ;;  %s2793_s12 = sld [smem:[#allocation7 + $0x64]] }
 0x12a   : > { %v913_v39 = vmul.f32 %v912_v11, %v900_v42  ;;  %v914_v29 = vmul.f32 %v912_v11, %v901_v35  ;;  %v910_v40 = vadd.f32 %v908_v54, %v874_v0  ;;  %v911_v43 = vadd.f32 %v909_v56, %v875_v20  ;;  %s2795_s14 = sld [smem:[#allocation7 + $0x7f]] }
 0x12b   : > { %v918_v57 = vmul.f32 %v917_v30, %v900_v42  ;;  %v919_v58 = vmul.f32 %v917_v30, %v901_v35  ;;  %v923_v1 = vmul.f32 %v922_v31, %v900_v42  ;;  %v924_v34 = vmul.f32 %v922_v31, %v901_v35 }
 0x12c   : > { %v927_v36 = vstv %s2692_s16  ;;  %v936_v45 = vsel %vm613_vm5, %v933_v48, %v935_v33  ;;  %v937_v55 = vsel %vm613_vm5, %v935_v33, %v933_v48  ;;  %v938_v6 = vstv %s2696_s6  ;;  %s2799_s16 = sld [smem:[#allocation7 + $0x9a]] }
 0x12d   : > { %v928_v63 = vmul.f32 %v927_v36, %v900_v42  ;;  %v929_v52 = vmul.f32 %v927_v36, %v901_v35  ;;  %v939_v7 = vmul.f32 %v938_v6, %v936_v45  ;;  %v940_v12 = vmul.f32 %v938_v6, %v937_v55  ;;  %s2804_s6 = sld [smem:[#allocation7 + $0x14]] }
 0x12e   : > { %v943_v13 = vstv %s2701_s7  ;;  %v948_v14 = vstv %s2703_s15  ;;  %v915_v59 = vadd.f32 %v913_v39, %v879_v9  ;;  %v916_v60 = vadd.f32 %v914_v29, %v880_v46  ;;  %v1007_v29 = vpop.permute.xlu1 %1006  ;;  %s2810_s7 = sld [smem:[#allocation7 + $0x2f]] }
 0x12f   : > { %v920_v10 = vadd.f32 %v918_v57, %v884_v49  ;;  %v921_v15 = vadd.f32 %v919_v58, %v885_v32  ;;  %v925_v19 = vadd.f32 %v923_v1, %v889_v51  ;;  %v944_v21 = vmul.f32 %v943_v13, %v936_v45  ;;  %s2813_s15 = sld [smem:[#allocation7 + $0x4a]] }
 0x130   : > { %v945_v16 = vmul.f32 %v943_v13, %v937_v55  ;;  %v949_v61 = vmul.f32 %v948_v14, %v936_v45  ;;  %v926_v22 = vadd.f32 %v924_v34, %v890_v24  ;;  %v930_v25 = vadd.f32 %v928_v63, %v894_v26 }
 0x131   : > { %v953_v41 = vstv %s2708_s20  ;;  %v958_v5 = vstv %s2711_s18  ;;  %v931_v27 = vadd.f32 %v929_v52, %v895_v18  ;;  %v941_v37 = vadd.f32 %v939_v7, %v905_v17  ;;  %s2815_s20 = sld [smem:[#allocation7 + $0x65]] }
 0x132   : > { %v942_v42 = vadd.f32 %v940_v12, %v906_v38  ;;  %v950_v0 = vmul.f32 %v948_v14, %v937_v55  ;;  %v954_v20 = vmul.f32 %v953_v41, %v936_v45  ;;  %v955_v2 = vmul.f32 %v953_v41, %v937_v55  ;;  %s2819_s18 = sld [smem:[#allocation7 + $0x80]] }
 0x133   : > { %v963_v23 = vstv %s2713_s23  ;;  %v972_v28 = vsel %vm650_vm6, %v969_v53, %v971_v62  ;;  %v946_v44 = vadd.f32 %v944_v21, %v910_v40  ;;  %v947_v35 = vadd.f32 %v945_v16, %v911_v43  ;;  %v1005_v40 = vpop.permute.xlu0 %1004  ;;  %s2822_s23 = sld [smem:[#allocation7 + $0x9b]] }
 0x134   : > { %v951_v3 = vadd.f32 %v949_v61, %v915_v59  ;;  %v959_v9 = vmul.f32 %v958_v5, %v936_v45  ;;  %v960_v46 = vmul.f32 %v958_v5, %v937_v55  ;;  %v964_v4 = vmul.f32 %v963_v23, %v936_v45 }
 0x135   : > { %v973_v47 = vsel %vm650_vm6, %v971_v62, %v969_v53  ;;  %v974_v48 = vstv %s2718_s10  ;;  %v952_v49 = vadd.f32 %v950_v0, %v916_v60  ;;  %v965_v32 = vmul.f32 %v963_v23, %v937_v55  ;;  %s2829_s10 = sld [smem:[#allocation7 + $0x15]] }
 0x136   : > { %v975_v50 = vmul.f32 %v974_v48, %v972_v28  ;;  %v976_v11 = vmul.f32 %v974_v48, %v973_v47  ;;  %v956_v51 = vadd.f32 %v954_v20, %v920_v10  ;;  %v957_v54 = vadd.f32 %v955_v2, %v921_v15 }
 0x137   : > { %v979_v56 = vstv %s2723_s1  ;;  %v984_v30 = vstv %s2727_s5  ;;  %v989_v18 = vstv %s2729_s21  ;;  %v994_v31 = vstv %s2731_s22  ;;  %s2831_s1 = sld [smem:[#allocation7 + $0x30]] }
 0x138   : > { %v980_v24 = vmul.f32 %v979_v56, %v972_v28  ;;  %v981_v26 = vmul.f32 %v979_v56, %v973_v47  ;;  %v961_v33 = vadd.f32 %v959_v9, %v925_v19  ;;  %v962_v17 = vadd.f32 %v960_v46, %v926_v22  ;;  %v1742_v56 = vld [vmem:[%s3100_s19 + $0x28] sm:$0xff]  ;;  %s2835_s5 = sld [smem:[#allocation7 + $0x4b]] }
 0x139   : > { %v966_v38 = vadd.f32 %v964_v4, %v930_v25  ;;  %v985_v39 = vmul.f32 %v984_v30, %v972_v28  ;;  %v967_v43 = vadd.f32 %v965_v32, %v931_v27  ;;  %v977_v57 = vadd.f32 %v975_v50, %v941_v37  ;;  %v1741_v50 = vld [vmem:[%s3100_s19 + $0x20] sm:$0xff]  ;;  %s2838_s21 = sld [smem:[#allocation7 + $0x66]] }
 0x13a   : > { %v978_v58 = vadd.f32 %v976_v11, %v942_v42  ;;  %v986_v1 = vmul.f32 %v984_v30, %v973_v47  ;;  %v982_v34 = vadd.f32 %v980_v24, %v946_v44  ;;  %v990_v36 = vmul.f32 %v989_v18, %v972_v28  ;;  %s2841_s22 = sld [smem:[#allocation7 + $0x81]] }
 0x13b   : > { %v991_v45 = vmul.f32 %v989_v18, %v973_v47  ;;  %v995_v63 = vmul.f32 %v994_v31, %v972_v28  ;;  %v983_v52 = vadd.f32 %v981_v26, %v947_v35  ;;  %v996_v55 = vmul.f32 %v994_v31, %v973_v47  ;;  %s2887_s19 = sld [smem:[#allocation7 + $0x9e]] }
 0x13c   : > { %v999_v6 = vstv %s2736_s24  ;;  %v1008_v7 = vsel %vm687_vm7, %v1005_v40, %v1007_v29  ;;  %v987_v12 = vadd.f32 %v985_v39, %v951_v3  ;;  %v1009_v14 = vsel %vm687_vm7, %v1007_v29, %v1005_v40  ;;  %s2843_s24 = sld [smem:[#allocation7 + $0x9c]] }
 0x13d   : > { %v1000_v13 = vmul.f32 %v999_v6, %v972_v28  ;;  %v1010_v59 = vstv %s2740_s25  ;;  %v1001_v60 = vmul.f32 %v999_v6, %v973_v47  ;;  %v1015_v15 = vstv %s2745_s13  ;;  %s2851_s25 = sld [smem:[#allocation7 + $0x16]] }
 0x13e   : > { %v1011_v10 = vmul.f32 %v1010_v59, %v1008_v7  ;;  %v1020_v53 = vstv %s2747_s27  ;;  %v988_v19 = vadd.f32 %v986_v1, %v952_v49  ;;  %v992_v21 = vadd.f32 %v990_v36, %v956_v51  ;;  %s2853_s13 = sld [smem:[#allocation7 + $0x31]] }
 0x13f   : > { %v993_v16 = vadd.f32 %v991_v45, %v957_v54  ;;  %v997_v61 = vadd.f32 %v995_v63, %v961_v33  ;;  %v1012_v62 = vmul.f32 %v1010_v59, %v1009_v14  ;;  %v1016_v22 = vmul.f32 %v1015_v15, %v1008_v7  ;;  %v1073_v54 = vpop.permute.xlu2 %1072  ;;  %s2857_s27 = sld [smem:[#allocation7 + $0x4c]] }
 0x140   : > { %v1017_v25 = vmul.f32 %v1015_v15, %v1009_v14  ;;  %v1021_v41 = vmul.f32 %v1020_v53, %v1008_v7  ;;  %v998_v5 = vadd.f32 %v996_v55, %v962_v17  ;;  %v1002_v27 = vadd.f32 %v1000_v13, %v966_v38  ;;  %v1075_v38 = vpop.permute.xlu0 %1074 }
 0x141   : > { %v1025_v37 = vstv %s2753_s28  ;;  %v1030_v42 = vstv %s2755_s29  ;;  %v1003_v0 = vadd.f32 %v1001_v60, %v967_v43  ;;  %v1013_v20 = vadd.f32 %v1011_v10, %v977_v57  ;;  %s2860_s28 = sld [smem:[#allocation7 + $0x67]] }
 0x142   : > { %v1022_v2 = vmul.f32 %v1020_v53, %v1009_v14  ;;  %v1026_v23 = vmul.f32 %v1025_v37, %v1008_v7  ;;  %v1027_v28 = vmul.f32 %v1025_v37, %v1009_v14  ;;  %v1031_v44 = vmul.f32 %v1030_v42, %v1008_v7  ;;  %s2863_s29 = sld [smem:[#allocation7 + $0x82]] }
 0x143   : > { %v1035_v35 = vstv %s2757_s30  ;;  %v1042_v3 = vstv %s2759_s4  ;;  %v1014_v9 = vadd.f32 %v1012_v62, %v978_v58  ;;  %v1018_v46 = vadd.f32 %v1016_v22, %v982_v34  ;;  %v1109_v22 = vpop.permute.xlu1 %1108  ;;  %s2865_s30 = sld [smem:[#allocation7 + $0x9d]] }
 0x144   : > { %v1019_v4 = vadd.f32 %v1017_v25, %v983_v52  ;;  %v1023_v47 = vadd.f32 %v1021_v41, %v987_v12  ;;  %v1032_v48 = vmul.f32 %v1030_v42, %v1009_v14  ;;  %v1036_v49 = vmul.f32 %v1035_v35, %v1008_v7  ;;  %s2873_s4 = sld [smem:[#allocation7 + $0x17]] }
 0x145   : > { %v1037_v32 = vmul.f32 %v1035_v35, %v1009_v14  ;;  %v1043_v11 = vmul.f32 %v1741_v50, %v1042_v3  ;;  %v1024_v51 = vadd.f32 %v1022_v2, %v988_v19  ;;  %v1044_v30 = vmul.f32 %v1742_v56, %v1042_v3 }
 0x146   : > { %v1047_v24 = vstv %s2767_s11  ;;  %v1052_v26 = vstv %s2771_s9  ;;  %v1028_v18 = vadd.f32 %v1026_v23, %v992_v21  ;;  %v1029_v31 = vadd.f32 %v1027_v28, %v993_v16  ;;  %s2875_s11 = sld [smem:[#allocation7 + $0x32]] }
 0x147   : > { %v1033_v33 = vadd.f32 %v1031_v44, %v997_v61  ;;  %v1048_v17 = vmul.f32 %v1741_v50, %v1047_v24  ;;  %v1049_v39 = vmul.f32 %v1742_v56, %v1047_v24  ;;  %v1053_v29 = vmul.f32 %v1741_v50, %v1052_v26  ;;  %v1111_v2 = vpop.permute.xlu2 %1110  ;;  %s2879_s9 = sld [smem:[#allocation7 + $0x4d]] }
 0x148   : > { %v1057_v40 = vstv %s2773_s8  ;;  %v1062_v43 = vstv %s2775_s17  ;;  %v1034_v57 = vadd.f32 %v1032_v48, %v998_v5  ;;  %v1038_v58 = vadd.f32 %v1036_v49, %v1002_v27  ;;  %s2882_s8 = sld [smem:[#allocation7 + $0x68]] }
 0x149   : > { %v1039_v1 = vadd.f32 %v1037_v32, %v1003_v0  ;;  %v1045_v34 = vadd.f32 %v1043_v11, %v1013_v20  ;;  %v1046_v36 = vadd.f32 %v1044_v30, %v1014_v9  ;;  %v1054_v45 = vmul.f32 %v1742_v56, %v1052_v26  ;;  %s2885_s17 = sld [smem:[#allocation7 + $0x83]] }
 0x14a   : > { %v1058_v63 = vmul.f32 %v1741_v50, %v1057_v40  ;;  %v1059_v52 = vmul.f32 %v1742_v56, %v1057_v40  ;;  %v1063_v55 = vmul.f32 %v1741_v50, %v1062_v43  ;;  %v1064_v6 = vmul.f32 %v1742_v56, %v1062_v43  ;;  %v1145_v43 = vpop.permute.xlu0 %1144 }
 0x14b   : > { %v1067_v7 = vstv %s2780_s26  ;;  %v1076_v12 = vsel %vm428_vm2, %v1073_v54, %v1075_v38  ;;  %v1050_v13 = vadd.f32 %v1048_v17, %v1018_v46  ;;  %v1051_v14 = vadd.f32 %v1049_v39, %v1019_v4  ;;  %s2895_s26 = sld [smem:[#allocation7 + $0x18]] }
 0x14c   : > { %v1055_v59 = vadd.f32 %v1053_v29, %v1023_v47  ;;  %v1068_v60 = vmul.f32 %v1741_v50, %v1067_v7  ;;  %v1069_v10 = vmul.f32 %v1742_v56, %v1067_v7  ;;  %v1077_v15 = vsel %vm428_vm2, %v1075_v38, %v1073_v54 }
 0x14d   : > { %v1078_v53 = vstv %s2783_s0  ;;  %v1083_v19 = vstv %s2785_s2  ;;  %v1056_v21 = vadd.f32 %v1054_v45, %v1024_v51  ;;  %v1060_v16 = vadd.f32 %v1058_v63, %v1028_v18  ;;  %s2897_s0 = sld [smem:[#allocation7 + $0x33]] }
 0x14e   : > { %v1079_v61 = vmul.f32 %v1078_v53, %v1076_v12  ;;  %v1088_v62 = vstv %s2788_s3  ;;  %v1061_v25 = vadd.f32 %v1059_v52, %v1029_v31  ;;  %v1065_v41 = vadd.f32 %v1063_v55, %v1033_v33  ;;  %v1147_v55 = vpop.permute.xlu1 %1146  ;;  %s2901_s2 = sld [smem:[#allocation7 + $0x4e]] }
 0x14f   : > { %v1066_v5 = vadd.f32 %v1064_v6, %v1034_v57  ;;  %v1080_v27 = vmul.f32 %v1078_v53, %v1077_v15  ;;  %v1084_v37 = vmul.f32 %v1083_v19, %v1076_v12  ;;  %v1085_v42 = vmul.f32 %v1083_v19, %v1077_v15  ;;  %s2904_s3 = sld [smem:[#allocation7 + $0x69]] }
 0x150   : > { %v1093_v0 = vstv %s2793_s12  ;;  %v1098_v20 = vstv %s2795_s14  ;;  %v1070_v23 = vadd.f32 %v1068_v60, %v1038_v58  ;;  %v1071_v28 = vadd.f32 %v1069_v10, %v1039_v1  ;;  %s2907_s12 = sld [smem:[#allocation7 + $0x84]] }
 0x151   : > { %v1089_v44 = vmul.f32 %v1088_v62, %v1076_v12  ;;  %v1090_v35 = vmul.f32 %v1088_v62, %v1077_v15  ;;  %v1081_v3 = vadd.f32 %v1079_v61, %v1045_v34  ;;  %v1094_v9 = vmul.f32 %v1093_v0, %v1076_v12  ;;  %s2909_s14 = sld [smem:[#allocation7 + $0x9f]] }
 0x152   : > { %v1095_v46 = vmul.f32 %v1093_v0, %v1077_v15  ;;  %v1099_v4 = vmul.f32 %v1098_v20, %v1076_v12  ;;  %v1103_v47 = vstv %s2799_s16  ;;  %v1112_v48 = vsel %vm465_vm1, %v1109_v22, %v1111_v2  ;;  %s2911_s16 = sld [smem:[#allocation7 + $0x19]] }
 0x153   : > { %v1113_v49 = vsel %vm465_vm1, %v1111_v2, %v1109_v22  ;;  %v1114_v32 = vstv %s2804_s6  ;;  %v1082_v50 = vadd.f32 %v1080_v27, %v1046_v36  ;;  %v1086_v11 = vadd.f32 %v1084_v37, %v1050_v13  ;;  %v1181_v2 = vpop.permute.xlu2 %1180  ;;  %s2919_s6 = sld [smem:[#allocation7 + $0x34]] }
 0x154   : > { %v1087_v51 = vadd.f32 %v1085_v42, %v1051_v14  ;;  %v1100_v54 = vmul.f32 %v1098_v20, %v1077_v15  ;;  %v1091_v56 = vadd.f32 %v1089_v44, %v1055_v59  ;;  %v1092_v30 = vadd.f32 %v1090_v35, %v1056_v21 }
 0x155   : > { %v1104_v24 = vmul.f32 %v1103_v47, %v1076_v12  ;;  %v1105_v26 = vmul.f32 %v1103_v47, %v1077_v15  ;;  %v1115_v18 = vmul.f32 %v1114_v32, %v1112_v48  ;;  %v1116_v31 = vmul.f32 %v1114_v32, %v1113_v49  ;;  %v1183_v47 = vpop.permute.xlu0 %1182 }
 0x156   : > { %v1119_v33 = vstv %s2810_s7  ;;  %v1124_v17 = vstv %s2813_s15  ;;  %v1096_v38 = vadd.f32 %v1094_v9, %v1060_v16  ;;  %v1097_v39 = vadd.f32 %v1095_v46, %v1061_v25  ;;  %s2921_s7 = sld [smem:[#allocation7 + $0x4f]] }
 0x157   : > { %v1101_v29 = vadd.f32 %v1099_v4, %v1065_v41  ;;  %v1129_v40 = vstv %s2815_s20  ;;  %v1102_v57 = vadd.f32 %v1100_v54, %v1066_v5  ;;  %v1120_v58 = vmul.f32 %v1119_v33, %v1112_v48  ;;  %s2925_s15 = sld [smem:[#allocation7 + $0x6a]] }
 0x158   : > { %v1121_v1 = vmul.f32 %v1119_v33, %v1113_v49  ;;  %v1134_v34 = vstv %s2819_s18  ;;  %v1106_v36 = vadd.f32 %v1104_v24, %v1070_v23  ;;  %v1107_v45 = vadd.f32 %v1105_v26, %v1071_v28  ;;  %s2928_s20 = sld [smem:[#allocation7 + $0x85]] }
 0x159   : > { %v1125_v63 = vmul.f32 %v1124_v17, %v1112_v48  ;;  %v1126_v52 = vmul.f32 %v1124_v17, %v1113_v49  ;;  %v1117_v6 = vadd.f32 %v1115_v18, %v1081_v3  ;;  %v1118_v7 = vadd.f32 %v1116_v31, %v1082_v50  ;;  %s2933_s18 = sld [smem:[#allocation7 + $0xa0]] }
 0x15a   : > { %v1130_v12 = vmul.f32 %v1129_v40, %v1112_v48  ;;  %v1131_v13 = vmul.f32 %v1129_v40, %v1113_v49  ;;  %v1122_v14 = vadd.f32 %v1120_v58, %v1086_v11  ;;  %v1123_v59 = vadd.f32 %v1121_v1, %v1087_v51 }
 0x15b   : > { %v1135_v60 = vmul.f32 %v1134_v34, %v1112_v48  ;;  %v1136_v10 = vmul.f32 %v1134_v34, %v1113_v49  ;;  %v1139_v15 = vstv %s2822_s23  ;;  %v1148_v53 = vsel %vm502_vm0, %v1145_v43, %v1147_v55  ;;  %v1217_v34 = vpop.permute.xlu1 %1216  ;;  %s2935_s23 = sld [smem:[#allocation7 + $0x1a]] }
 0x15c   : > { %v1149_v19 = vsel %vm502_vm0, %v1147_v55, %v1145_v43  ;;  %v1150_v21 = vstv %s2829_s10  ;;  %v1127_v16 = vadd.f32 %v1125_v63, %v1091_v56  ;;  %v1128_v61 = vadd.f32 %v1126_v52, %v1092_v30  ;;  %s2943_s10 = sld [smem:[#allocation7 + $0x35]] }
 0x15d   : > { %v1140_v62 = vmul.f32 %v1139_v15, %v1112_v48  ;;  %v1141_v22 = vmul.f32 %v1139_v15, %v1113_v49  ;;  %v1151_v25 = vmul.f32 %v1150_v21, %v1148_v53  ;;  %v1152_v41 = vmul.f32 %v1150_v21, %v1149_v19 }
 0x15e   : > { %v1155_v5 = vstv %s2831_s1  ;;  %v1160_v27 = vstv %s2835_s5  ;;  %v1132_v37 = vadd.f32 %v1130_v12, %v1096_v38  ;;  %v1133_v42 = vadd.f32 %v1131_v13, %v1097_v39  ;;  %s2945_s1 = sld [smem:[#allocation7 + $0x50]] }
 0x15f   : > { %v1137_v0 = vadd.f32 %v1135_v60, %v1101_v29  ;;  %v1165_v20 = vstv %s2838_s21  ;;  %v1138_v23 = vadd.f32 %v1136_v10, %v1102_v57  ;;  %v1156_v28 = vmul.f32 %v1155_v5, %v1148_v53  ;;  %s2950_s5 = sld [smem:[#allocation7 + $0x6b]] }
 0x160   : > { %v1157_v44 = vmul.f32 %v1155_v5, %v1149_v19  ;;  %v1170_v35 = vstv %s2841_s22  ;;  %v1142_v3 = vadd.f32 %v1140_v62, %v1106_v36  ;;  %v1143_v9 = vadd.f32 %v1141_v22, %v1107_v45  ;;  %s3101_s21 = sld [smem:[#allocation23_spill]] }
 0x161   : > { %v1161_v46 = vmul.f32 %v1160_v27, %v1148_v53  ;;  %v1162_v4 = vmul.f32 %v1160_v27, %v1149_v19  ;;  %v1153_v48 = vadd.f32 %v1151_v25, %v1117_v6  ;;  %v1154_v49 = vadd.f32 %v1152_v41, %v1118_v7  ;;  %s2953_s22 = sld [smem:[#allocation7 + $0x86]] }
 0x162   : > { %v1166_v32 = vmul.f32 %v1165_v20, %v1148_v53  ;;  %v1167_v50 = vmul.f32 %v1165_v20, %v1149_v19  ;;  %v1158_v11 = vadd.f32 %v1156_v28, %v1122_v14  ;;  %v1159_v51 = vadd.f32 %v1157_v44, %v1123_v59  ;;  %v1219_v14 = vpop.permute.xlu2 %1218 }
 0x163   : > { %v1171_v54 = vmul.f32 %v1170_v35, %v1148_v53  ;;  %v1172_v56 = vmul.f32 %v1170_v35, %v1149_v19  ;;  %v1175_v30 = vstv %s2843_s24  ;;  %v1184_v24 = vsel %vm539_vm3, %v1181_v2, %v1183_v47 }
 0x164   : > { %v1185_v26 = vsel %vm539_vm3, %v1183_v47, %v1181_v2  ;;  %v1186_v18 = vstv %s2851_s25  ;;  %v1163_v31 = vadd.f32 %v1161_v46, %v1127_v16  ;;  %v1164_v33 = vadd.f32 %v1162_v4, %v1128_v61  ;;  %s2957_s25 = sld [smem:[#allocation7 + $0xa1]] }
 0x165   : > { %v1176_v17 = vmul.f32 %v1175_v30, %v1148_v53  ;;  %v1177_v38 = vmul.f32 %v1175_v30, %v1149_v19  ;;  %v1187_v39 = vmul.f32 %v1186_v18, %v1184_v24  ;;  %v1188_v29 = vmul.f32 %v1186_v18, %v1185_v26 }
 0x166   : > { %v1191_v40 = vstv %s2853_s13  ;;  %v1196_v43 = vstv %s2857_s27  ;;  %v1168_v57 = vadd.f32 %v1166_v32, %v1132_v37  ;;  %v1169_v58 = vadd.f32 %v1167_v50, %v1133_v42  ;;  %s1664_s24 = smul.u32 96, %s3101_s21  ;;  %s3102_s13 = sld [smem:[#allocation18_spill]] }
 0x167   : > { %v1173_v1 = vadd.f32 %v1171_v54, %v1137_v0  ;;  %v1201_v36 = vstv %s2860_s28  ;;  %v1174_v45 = vadd.f32 %v1172_v56, %v1138_v23  ;;  %v1192_v63 = vmul.f32 %v1191_v40, %v1184_v24 }
 0x168   : > { %v1193_v52 = vmul.f32 %v1191_v40, %v1185_v26  ;;  %v1206_v55 = vstv %s2863_s29  ;;  %v1178_v6 = vadd.f32 %v1176_v17, %v1142_v3  ;;  %v1179_v7 = vadd.f32 %v1177_v38, %v1143_v9  ;;  %v1253_v3 = vpop.permute.xlu0 %1252  ;;  %s2968_s27 = scalar_lea.vmem [#allocation9], %s1664_s24 }
 0x169   : > { %v1197_v12 = vmul.f32 %v1196_v43, %v1184_v24  ;;  %v1198_v13 = vmul.f32 %v1196_v43, %v1185_v26  ;;  %v1189_v59 = vadd.f32 %v1187_v39, %v1153_v48  ;;  %v1190_v60 = vadd.f32 %v1188_v29, %v1154_v49 }
 0x16a   : > { %v1202_v10 = vmul.f32 %v1201_v36, %v1184_v24  ;;  %v1203_v15 = vmul.f32 %v1201_v36, %v1185_v26  ;;  %v1194_v53 = vadd.f32 %v1192_v63, %v1158_v11  ;;  %v1195_v19 = vadd.f32 %v1193_v52, %v1159_v51  ;;  %v1255_v11 = vpop.permute.xlu1 %1254 }
 0x16b   : > { %v1207_v21 = vmul.f32 %v1206_v55, %v1184_v24  ;;  %v1208_v16 = vmul.f32 %v1206_v55, %v1185_v26  ;;  %v1211_v61 = vstv %s2865_s30  ;;  %v1220_v62 = vsel %vm576_vm4, %v1217_v34, %v1219_v14 }
 0x16c   : > { %v1221_v22 = vsel %vm576_vm4, %v1219_v14, %v1217_v34  ;;  %v1222_v25 = vstv %s2873_s4  ;;  %v1199_v41 = vadd.f32 %v1197_v12, %v1163_v31  ;;  %v1200_v5 = vadd.f32 %v1198_v13, %v1164_v33  ;;  %s1665_s28 = smul.u32 96, %s3102_s13  ;;  %s3103_s4 = sld [smem:[#allocation31_spill]] }
 0x16d   : > { %v1212_v27 = vmul.f32 %v1211_v61, %v1184_v24  ;;  %v1213_v37 = vmul.f32 %v1211_v61, %v1185_v26  ;;  %v1223_v42 = vmul.f32 %v1222_v25, %v1220_v62  ;;  %v1224_v0 = vmul.f32 %v1222_v25, %v1221_v22 }
 0x16e   : > { %v1227_v20 = vstv %s2875_s11  ;;  %v1232_v2 = vstv %s2879_s9  ;;  %v1204_v23 = vadd.f32 %v1202_v10, %v1168_v57  ;;  %v1205_v28 = vadd.f32 %v1203_v15, %v1169_v58 }
 0x16f   : > { %v1209_v44 = vadd.f32 %v1207_v21, %v1173_v1  ;;  %v1237_v35 = vstv %s2882_s8  ;;  %v1210_v9 = vadd.f32 %v1208_v16, %v1174_v45  ;;  %v1228_v46 = vmul.f32 %v1227_v20, %v1220_v62  ;;  %s1386_s8 = sshll.u32 %s2968_s27, 4  ;;  %s1387_s8 = int_to_ptr.vmem [resolvable:$true] %s1386_s8 }
 0x170   : > { %v1229_v4 = vmul.f32 %v1227_v20, %v1221_v22  ;;  %v1242_v47 = vstv %s2885_s17  ;;  %v1214_v48 = vadd.f32 %v1212_v27, %v1178_v6  ;;  %v1215_v49 = vadd.f32 %v1213_v37, %v1179_v7  ;;  %v1289_v6 = vpop.permute.xlu2 %1288 }
 0x171   : > { %v1233_v32 = vmul.f32 %v1232_v2, %v1220_v62  ;;  %v1234_v50 = vmul.f32 %v1232_v2, %v1221_v22  ;;  %v1225_v51 = vadd.f32 %v1223_v42, %v1189_v59  ;;  %v1226_v54 = vadd.f32 %v1224_v0, %v1190_v60 }
 0x172   : > { %v1238_v56 = vmul.f32 %v1237_v35, %v1220_v62  ;;  %v1239_v30 = vmul.f32 %v1237_v35, %v1221_v22  ;;  %v1230_v24 = vadd.f32 %v1228_v46, %v1194_v53  ;;  %v1231_v26 = vadd.f32 %v1229_v4, %v1195_v19  ;;  %v1291_v53 = vpop.permute.xlu0 %1290  ;;  %s1384_s11 = scalar_lea.hbm %s3103_s4, %s1665_s28 }
 0x173   : > { %v1243_v18 = vmul.f32 %v1242_v47, %v1220_v62  ;;  %v1244_v31 = vmul.f32 %v1242_v47, %v1221_v22  ;;  %v1247_v33 = vstv %s2887_s19  ;;  %v1256_v17 = vsel %vm613_vm5, %v1253_v3, %v1255_v11  ;;  %s1388_s17 = sshll.u32 %s1384_s11, 4  ;;  %s1373_s19 = scalar_lea.sflag [#allocation4], %s3101_s21  ;;  %s1389_s17 = int_to_ptr.hbm [resolvable:$true] %s1388_s17 }
 0x174   : > { %v1257_v38 = vsel %vm613_vm5, %v1255_v11, %v1253_v3  ;;  %v1258_v39 = vstv %s2895_s26  ;;  %v1235_v29 = vadd.f32 %v1233_v32, %v1199_v41  ;;  %v1236_v40 = vadd.f32 %v1234_v50, %v1200_v5  ;;  %s1817_s26 = sshra.s32 %s1389_s17, 4  ;;  %s1818_s26 = int_to_ptr.hbm [resolvable:$true] %s1817_s26 }
 0x175   : > { %v1248_v43 = vmul.f32 %v1247_v33, %v1220_v62  ;;  %v1249_v57 = vmul.f32 %v1247_v33, %v1221_v22  ;;  %v1259_v58 = vmul.f32 %v1258_v39, %v1256_v17  ;;  %v1260_v1 = vmul.f32 %v1258_v39, %v1257_v38  ;;  %p1824_p9 = scmp.lt.s32.totalorder %s1818_s26, %s3103_s4 }
 0x176   : > { %v1263_v34 = vstv %s2897_s0  ;;  %v1268_v36 = vstv %s2901_s2  ;;  %v1240_v45 = vadd.f32 %v1238_v56, %v1204_v23  ;;  %v1241_v63 = vadd.f32 %v1239_v30, %v1205_v28  ;;  %s1819_s0 = scalar_lea.hbm %s1818_s26, 96 }
 0x177   : > { %v1245_v52 = vadd.f32 %v1243_v18, %v1209_v44  ;;  %v1273_v55 = vstv %s2904_s3  ;;  %v1246_v7 = vadd.f32 %v1244_v31, %v1210_v9  ;;  %v1264_v12 = vmul.f32 %v1263_v34, %v1256_v17  ;;  %p1820_p1 = scmp.ne.s32.totalorder %s1818_s26, %s1819_s0 }
 0x178   : > { %v1265_v13 = vmul.f32 %v1263_v34, %v1257_v38  ;;  %v1278_v14 = vstv %s2907_s12  ;;  %v1250_v59 = vadd.f32 %v1248_v43, %v1214_v48  ;;  %v2931_v60 = vadd.f32 %v1249_v57, %v1215_v49  ;;  %v1327_v30 = vpop.permute.xlu2 %1326  ;;  %s1823_s12 = scalar_lea.hbm %s3103_s4, 192 }
 0x179   : > { %v1269_v10 = vmul.f32 %v1268_v36, %v1256_v17  ;;  %v1270_v15 = vmul.f32 %v1268_v36, %v1257_v38  ;;  %v1261_v19 = vadd.f32 %v1259_v58, %v1225_v51  ;;  %v1262_v21 = vadd.f32 %v1260_v1, %v1226_v54  ;;  %p1821_p4 = pnand %p1820_p1, %p1978_p5  ;;  %p1825_p10 = scmp.lt.s32.totalorder %s1823_s12, %s1819_s0 }
 0x17a   : > { %v1274_v16 = vmul.f32 %v1273_v55, %v1256_v17  ;;  %v1275_v61 = vmul.f32 %v1273_v55, %v1257_v38  ;;  %v1266_v62 = vadd.f32 %v1264_v12, %v1230_v24  ;;  %v1267_v22 = vadd.f32 %v1265_v13, %v1231_v26  ;;  %v1325_v24 = vpop.permute.xlu1 %1324 }
 0x17b   : > { %v1279_v25 = vmul.f32 %v1278_v14, %v1256_v17  ;;  %v1280_v41 = vmul.f32 %v1278_v14, %v1257_v38  ;;  %v1283_v5 = vstv %s2909_s14  ;;  %v1292_v27 = vsel %vm650_vm6, %v1289_v6, %v1291_v53  ;;  %p1822_p8 = pneg %p1821_p4  ;;  %p1826_p2 = por %p1825_p10, %p1824_p9 }
 0x17c   : > { %v1293_v37 = vsel %vm650_vm6, %v1291_v53, %v1289_v6  ;;  %v1294_v42 = vstv %s2911_s16  ;;  %v1271_v0 = vadd.f32 %v1269_v10, %v1235_v29  ;;  %v1272_v20 = vadd.f32 %v1270_v15, %v1236_v40 }
 0x17d   : > { %v1284_v2 = vmul.f32 %v1283_v5, %v1256_v17  ;;  %v1295_v23 = vmul.f32 %v1294_v42, %v1292_v27  ;;  %v1296_v28 = vmul.f32 %v1294_v42, %v1293_v37  ;;  %v1299_v44 = vstv %s2919_s6  ;;  %p1827_p11 = pnand %p1826_p2, %p1822_p8 }
 0x17e   : > { %v1304_v35 = vstv %s2921_s7  ;;  %v1309_v3 = vstv %s2925_s15  ;;  %v1276_v9 = vadd.f32 %v1274_v16, %v1240_v45  ;;  %v1277_v46 = vadd.f32 %v1275_v61, %v1241_v63 }
 0x17f   : > { %v1281_v4 = vadd.f32 %v1279_v25, %v1245_v52  ;;  %v1314_v47 = vstv %s2928_s20  ;;  %v1282_v48 = vadd.f32 %v1280_v41, %v1246_v7  ;;  %v1300_v49 = vmul.f32 %v1299_v44, %v1292_v27 }
 0x180   : > { %v1301_v32 = vmul.f32 %v1299_v44, %v1293_v37  ;;  %v1305_v50 = vmul.f32 %v1304_v35, %v1292_v27  ;;  %v1285_v11 = vmul.f32 %v1283_v5, %v1257_v38  ;;  %v1286_v51 = vadd.f32 %v1284_v2, %v1250_v59 }
 0x181   : > { %v1306_v54 = vmul.f32 %v1304_v35, %v1293_v37  ;;  %v1310_v56 = vmul.f32 %v1309_v3, %v1292_v27  ;;  %v1297_v26 = vadd.f32 %v1295_v23, %v1261_v19  ;;  %v1298_v18 = vadd.f32 %v1296_v28, %v1262_v21 }
 0x182   : > { %v1311_v31 = vmul.f32 %v1309_v3, %v1293_v37  ;;  %v1315_v33 = vmul.f32 %v1314_v47, %v1292_v27  ;;  %v1302_v17 = vadd.f32 %v1300_v49, %v1266_v62  ;;  %v1303_v39 = vadd.f32 %v1301_v32, %v1267_v22 }
 0x183   : > { %v1307_v29 = vadd.f32 %v1305_v50, %v1271_v0  ;;  %v1316_v40 = vmul.f32 %v1314_v47, %v1293_v37  ;;  %v1319_v43 = vstv %s2933_s18  ;;  %v1328_v38 = vsel %vm687_vm7, %v1325_v24, %v1327_v30 }
 0x184   : > { %v1329_v57 = vsel %vm687_vm7, %v1327_v30, %v1325_v24  ;;  %v1330_v58 = vstv %s2935_s23  ;;  %v1308_v1 = vadd.f32 %v1306_v54, %v1272_v20  ;;  %v1312_v34 = vadd.f32 %v1310_v56, %v1276_v9 }
 0x185   : > { %v1331_v36 = vmul.f32 %v1330_v58, %v1328_v38  ;;  %v1332_v45 = vmul.f32 %v1330_v58, %v1329_v57  ;;  %v1313_v63 = vadd.f32 %v1311_v31, %v1277_v46  ;;  %v1335_v52 = vstv %s2943_s10 }
 0x186   : > { %v1340_v55 = vstv %s2945_s1  ;;  %v1345_v6 = vstv %s2950_s5  ;;  %v1320_v7 = vmul.f32 %v1319_v43, %v1292_v27  ;;  %v1350_v14 = vstv %s2953_s22 }
 0x187   : > { %v1333_v12 = vadd.f32 %v1331_v36, %v1297_v26  ;;  %v1334_v13 = vadd.f32 %v1332_v45, %v1298_v18  ;;  %v1336_v59 = vmul.f32 %v1335_v52, %v1328_v38  ;;  %v1337_v10 = vmul.f32 %v1335_v52, %v1329_v57 }
 0x188   : > { %v1341_v15 = vmul.f32 %v1340_v55, %v1328_v38  ;;  %v1342_v53 = vmul.f32 %v1340_v55, %v1329_v57  ;;  %v1317_v8 = vadd.f32 %v1315_v33, %v1281_v4  ;;  %v1321_v19 = vmul.f32 %v1319_v43, %v1293_v37 }
 0x189   : > { %v1346_v21 = vmul.f32 %v1345_v6, %v1328_v38  ;;  %v1347_v16 = vmul.f32 %v1345_v6, %v1329_v57  ;;  %1360 = vst [vmem:[%s2968_s27] sm:$0xff] %v1333_v12  ;;  %v1338_v61 = vadd.f32 %v1336_v59, %v1302_v17  ;;  %v1339_v62 = vadd.f32 %v1337_v10, %v1303_v39 }
 0x18a   : > { %v1343_v22 = vadd.f32 %v1341_v15, %v1307_v29  ;;  %v1351_v25 = vmul.f32 %v1350_v14, %v1328_v38  ;;  %1361 = vst [vmem:[%s2968_s27 + $0x8] sm:$0xff] %v1334_v13  ;;  %v1287_v41 = vadd.f32 %v1285_v11, %v2931_v60  ;;  %v1318_v5 = vadd.f32 %v1316_v40, %v1282_v48 }
 0x18b   : > { %v1344_v27 = vadd.f32 %v1342_v53, %v1308_v1  ;;  %v1352_v37 = vmul.f32 %v1350_v14, %v1329_v57  ;;  %v1322_v42 = vadd.f32 %v1320_v7, %v1286_v51  ;;  %v1348_v0 = vadd.f32 %v1346_v21, %v1312_v34  ;;  %1362 = vst [vmem:[%s2968_s27 + $0x10] sm:$0xff] %v1338_v61 }
 0x18c   : > { %v1355_v20 = vstv %s2957_s25  ;;  %v1323_v2 = vadd.f32 %v1321_v19, %v1287_v41  ;;  %v1349_v23 = vadd.f32 %v1347_v16, %v1313_v63  ;;  %1363 = vst [vmem:[%s2968_s27 + $0x18] sm:$0xff] %v1339_v62  ;;  %v1353_v60 = vadd.f32 %v1351_v25, %v1317_v8 }
 0x18d   : > { %v1356_v28 = vmul.f32 %v1355_v20, %v1328_v38  ;;  %v1357_v44 = vmul.f32 %v1355_v20, %v1329_v57  ;;  %1364 = vst [vmem:[%s2968_s27 + $0x20] sm:$0xff] %v1343_v22  ;;  %v1354_v35 = vadd.f32 %v1352_v37, %v1318_v5 }
 0x18e   : > { %1365 = vst [vmem:[%s2968_s27 + $0x28] sm:$0xff] %v1344_v27 }
 0x18f   : > { %v1358_v3 = vadd.f32 %v1356_v28, %v1322_v42  ;;  %1366 = vst [vmem:[%s2968_s27 + $0x30] sm:$0xff] %v1348_v0  ;;  %v1359_v9 = vadd.f32 %v1357_v44, %v1323_v2 }
 0x190   : > { %1367 = vst [vmem:[%s2968_s27 + $0x38] sm:$0xff] %v1349_v23 }
 0x191   : > { %1368 = vst [vmem:[%s2968_s27 + $0x40] sm:$0xff] %v1353_v60 }
 0x192   : > { %1369 = vst [vmem:[%s2968_s27 + $0x48] sm:$0xff] %v1354_v35 }
 0x193   : > { %1370 = vst [vmem:[%s2968_s27 + $0x50] sm:$0xff] %v1358_v3 }
 0x194   : > { %1371 = vst [vmem:[%s2968_s27 + $0x58] sm:$0xff] %v1359_v9 }
 0x195   : > { %1830 = shalt.err (!%p1827_p11)
}
 0x196   : > { %1676 = dma.vmem_to_hbm [thread:$0]  (%p1978_p5), %s1387_s8, 1536, %s1389_s17, %s1373_s19  }
 0x197 PF: > { %s3105_s6 = sld [smem:[#allocation14_spill]] }
 0x198   : > { %s3107_s15 = sld [smem:[#allocation17_spill]] }
 0x19d   : > { %s1400_s20 = sand.u32 1, %s3105_s6  }
 0x19e   : > { %p3108_p12 = scmp.ge.s32.totalorder %s3107_s15, 2  ;;  %s1401_s18 = scalar_lea.sflag [#allocation4], %s1400_s20 }
 0x1a0   : > { %p1690_p13 = pnand %p3108_p12, %p1944_p6 }
 0x1a2   : > { %p1691_p0 = pneg %p1690_p13 }
 0x1a4   : > { %1860 = dma.done.wait (%p1691_p0), %s1401_s18, 1536  }
 0x1a5   : > { %1862 = vsyncadd (%p1691_p0), %s1401_s18, 4294965760  ;;  %s3109_s15 = sld [smem:[#allocation20_spill]] }
 0x1a6   : > { %s3110_s12 = sld [smem:[#allocation15_spill]] }
 0x1a7   : > { %s3111_s13 = sld [smem:[#allocation16_spill]] }
 0x1a8   : > { %s3112_s14 = sld [smem:[#allocation21_spill]] }
 0x1ab   : > { %p18_p3 = scmp.ge.s32.totalorder %s3109_s15, 4  }
 0x1ad   :  { %20 = sbr.rel (!%p18_p3) target bundleno = 12 (0xc), region = 87 }
 0x1b2   :  { %1407 = vsyncpa [#allocation3], 1 }
 0x1b3   :  { %1409 = vsyncpa [#allocation3 + $0x1], 1 }
 0x1b4   :  { %1410 = vsyncpa [#allocation4], 1 }
 0x1b5   :  { %1412 = vsyncpa [#allocation4 + $0x1], 1 }
 0x1b6   :  { %1413 = vsyncpa [#allocation5], 1 }
 0x1b7   :  { %1415 = vsyncpa [#allocation5 + $0x1], 1 }
 0x1b8   :  { %1416 = vsyncpa [#allocation6], 1 }
 0x1b9   :  { %1418 = vsyncpa [#allocation6 + $0x1], 1 }

</bundles_post_ra>
